<compile_context>
chip_gen: v5e
topology: v5e:2x2
jax: 0.10.0
libtpu: 0.0.40
codegen_flags: <defaults>
</compile_context>

<pallas_src>
import functools

import jax
import jax.numpy as jnp
from jax.experimental import pallas as pl
from jax.experimental.pallas import tpu as pltpu

LANES = 128
C1, C2, C3 = 6, 16, 120  # LeNet channel counts


def _round_up(x, m):
    return ((x + m - 1) // m) * m


# ---------------- Pallas fused matmul + bias (+ReLU), single K/N tile -------
def _matmul_bias_relu_kernel(x_ref, w_ref, b_ref, o_ref, *, apply_relu):
    acc = jnp.dot(x_ref[...], w_ref[...], preferred_element_type=jnp.float32)
    acc = acc + b_ref[...]
    if apply_relu:
        acc = jnp.maximum(acc, 0.0)
    o_ref[...] = acc.astype(o_ref.dtype)


def matmul_bias_act(x_bf16, w_bf16, b_f32, *, relu=True, m_blocks=1):
    """x: (M, K) bf16 (true K, no padding); w: (K, Np) bf16, Np % 128 == 0;
    b: (1, Np) f32.  Returns (M, Np) f32.  Only the M axis is (optionally)
    split into m_blocks; K and N always fit a single tile at LeNet sizes."""
    M, K = x_bf16.shape
    Kw, Np = w_bf16.shape
    assert Kw == K and Np % LANES == 0 and b_f32.shape == (1, Np)

    # tm must be a sublane-aligned divisor of the real M (no M padding).
    if m_blocks > 1 and (M % m_blocks != 0 or (M // m_blocks) % 16 != 0):
        m_blocks = 1
    tm = M // m_blocks

    return pl.pallas_call(
        functools.partial(_matmul_bias_relu_kernel, apply_relu=relu),
        out_shape=jax.ShapeDtypeStruct((M, Np), jnp.float32),
        grid_spec=pltpu.PrefetchScalarGridSpec(
            num_scalar_prefetch=0,
            grid=(m_blocks,),
            in_specs=[
                pl.BlockSpec((tm, K), lambda i: (i, 0)),
                pl.BlockSpec((K, Np), lambda i: (0, 0)),
                pl.BlockSpec((1, Np), lambda i: (0, 0)),
            ],
            out_specs=pl.BlockSpec((tm, Np), lambda i: (i, 0)),
        ),
        compiler_params=pltpu.CompilerParams(
            dimension_semantics=("parallel",)),
    )(x_bf16, w_bf16, b_f32)


# ---------------- Pallas fused classifier tail: conv3 + fc1 + fc2 -----------
def _classifier_tail_kernel(x_ref, w3_ref, b3_ref, w4_ref, b4_ref,
                            w5_ref, b5_ref, o_ref):
    # conv3 is spatially 1x1 here, so it is a pure (N,400)x(400,120) matmul.
    h = jnp.dot(x_ref[...], w3_ref[...], preferred_element_type=jnp.float32)
    h = jnp.maximum(h + b3_ref[...], 0.0)                       # conv3 + ReLU
    h = jnp.dot(h.astype(jnp.bfloat16), w4_ref[...],
                preferred_element_type=jnp.float32)
    h = jnp.maximum(h + b4_ref[...], 0.0)                       # fc1 + ReLU
    h = jnp.dot(h.astype(jnp.bfloat16), w5_ref[...],
                preferred_element_type=jnp.float32)
    o_ref[...] = h + b5_ref[...]                                # fc2 (no ReLU)


def classifier_tail(x_bf16, p):
    """x: (N, 400) bf16 -> (N, 128) f32 logits (padded lanes are zero)."""
    M = x_bf16.shape[0]
    return pl.pallas_call(
        _classifier_tail_kernel,
        out_shape=jax.ShapeDtypeStruct((M, LANES), jnp.float32),
    )(x_bf16, p["conv3_w"], p["conv3_b"], p["fc1_w"], p["fc1_b"],
      p["fc2_w"], p["fc2_b"])


# ---------------- Pallas elementwise max-of-4 kernel (MaxPool2d(2)) ---------
def _max4_kernel(a_ref, b_ref, c_ref, d_ref, o_ref):
    o_ref[...] = jnp.maximum(jnp.maximum(a_ref[...], b_ref[...]),
                             jnp.maximum(c_ref[...], d_ref[...]))


def maxpool2d_2x2(x):
    """x: (N, H, W, C) f32 with C a multiple of 128 (lane-dense). Four strided
    views are built by XLA (no 4x stacked copy); the Pallas kernel does a
    single VPU max tree with unmasked 128-lane stores."""
    N, H, W, C = x.shape
    OH, OW = H // 2, W // 2
    views = [x[:, dy::2, dx::2, :].reshape(N * OH * OW, C)
             for dy in range(2) for dx in range(2)]
    out = pl.pallas_call(
        _max4_kernel,
        out_shape=jax.ShapeDtypeStruct((N * OH * OW, C), x.dtype),
    )(*views)
    return out.reshape(N, OH, OW, C)


# ---------------- im2col (XLA glue) ------------------------------------------
def im2col(x, kh, kw):
    """x: (N, H, W, C) -> (N*OH*OW, KH*KW*C); stride 1, no pad; K order (ky,kx,c)."""
    N, H, W, C = x.shape
    OH, OW = H - kh + 1, W - kw + 1
    patches = [x[:, ky:ky + OH, kx:kx + OW, :]
               for ky in range(kh) for kx in range(kw)]
    p = jnp.stack(patches, axis=3)                   # (N, OH, OW, KH*KW, C)
    return p.reshape(N * OH * OW, kh * kw * C)


# ---------------- Parameters (deterministic, in-script) ---------------------
def init_params(key, num_classes):
    def conv_p(k, cout, cin, ks):
        k1, k2 = jax.random.split(k)
        scale = 1.0 / (cin * ks * ks) ** 0.5
        return (jax.random.normal(k1, (cout, cin, ks, ks), jnp.float32) * scale,
                jax.random.normal(k2, (cout,), jnp.float32) * scale)

    def lin_p(k, cin, cout):
        k1, k2 = jax.random.split(k)
        scale = 1.0 / cin ** 0.5
        return (jax.random.normal(k1, (cin, cout), jnp.float32) * scale,
                jax.random.normal(k2, (cout,), jnp.float32) * scale)

    keys = jax.random.split(key, 5)
    return {
        "conv1": conv_p(keys[0], C1, 1, 5),
        "conv2": conv_p(keys[1], C2, C1, 5),
        "conv3": conv_p(keys[2], C3, C2, 5),
        "fc1": lin_p(keys[3], C3, 84),
        "fc2": lin_p(keys[4], 84, num_classes),
    }


def prepare_params(params):
    """One-time weight re-layout (hoisted out of the forward): transpose conv
    weights to (KH*KW*Cin, Cout), pad only the output dim to 128 lanes (true K
    is kept), cast weights to bf16, biases to (1, 128) f32."""
    def conv_mat(w):                      # (Cout,Cin,KH,KW) -> (KH*KW*Cin, Cout)
        cout, cin, kh, kw = w.shape
        return jnp.transpose(w, (2, 3, 1, 0)).reshape(kh * kw * cin, cout)

    def pad_kn(w, kp, npad):              # zero-pad to (kp, npad), cast bf16
        k, n = w.shape
        return (jnp.zeros((kp, npad), jnp.float32).at[:k, :n].set(w)
                .astype(jnp.bfloat16))

    def pad_bias(b, npad):
        return jnp.zeros((1, npad), jnp.float32).at[0, :b.shape[0]].set(b)

    (w1, b1), (w2, b2), (w3, b3) = params["conv1"], params["conv2"], params["conv3"]
    (w4, b4), (w5, b5) = params["fc1"], params["fc2"]
    m1, m2, m3 = conv_mat(w1), conv_mat(w2), conv_mat(w3)   # (25,6) (150,16) (400,120)
    return {
        "conv1_w": pad_kn(m1, m1.shape[0], LANES), "conv1_b": pad_bias(b1, LANES),
        "conv2_w": pad_kn(m2, m2.shape[0], LANES), "conv2_b": pad_bias(b2, LANES),
        "conv3_w": pad_kn(m3, m3.shape[0], LANES), "conv3_b": pad_bias(b3, LANES),
        # fc weights fed by 128-lane activations -> pad both dims to 128.
        "fc1_w": pad_kn(w4, LANES, LANES), "fc1_b": pad_bias(b4, LANES),
        "fc2_w": pad_kn(w5, LANES, LANES), "fc2_b": pad_bias(b5, LANES),
    }


# ---------------- LeNet.forward ---------------------------------------------
def lenet_forward(p, x_nchw, num_classes):
    N = x_nchw.shape[0]
    x = jnp.transpose(x_nchw, (0, 2, 3, 1)).astype(jnp.float32)   # NCHW -> NHWC

    # conv1 + ReLU  (im2col matmul, 2 parallel M blocks for v7x's 2 TCs)
    xc = im2col(x, 5, 5).astype(jnp.bfloat16)                     # (N*28*28, 25)
    h = matmul_bias_act(xc, p["conv1_w"], p["conv1_b"], relu=True, m_blocks=2)
    h = maxpool2d_2x2(h.reshape(N, 28, 28, LANES))                # (N,14,14,128)

    # conv2 + ReLU  (slice back to the 6 real channels only for im2col)
    xc = im2col(h[..., :C1], 5, 5).astype(jnp.bfloat16)           # (N*10*10, 150)
    h = matmul_bias_act(xc, p["conv2_w"], p["conv2_b"], relu=True, m_blocks=1)
    h = maxpool2d_2x2(h.reshape(N, 10, 10, LANES))                # (N,5,5,128)

    # conv3(+ReLU) + fc1(+ReLU) + fc2 fused into one Pallas kernel.
    # conv3 output is 1x1 spatial, so flatten order matches torch.flatten(x,1).
    flat = h[..., :C2].reshape(N, 5 * 5 * C2).astype(jnp.bfloat16)  # (N, 400)
    out = classifier_tail(flat, p)                                   # (N, 128)
    return out[:, :num_classes]


if __name__ == "__main__":
    num_classes = 10
    key = jax.random.PRNGKey(0)
    pkey, xkey = jax.random.split(key)
    params = init_params(pkey, num_classes)
    prepped = prepare_params(params)          # one-time weight re-layout
    # Canonical LeNet input: 1 channel, 32x32 (so conv3 output is 1x1x120).
    x = jax.random.normal(xkey, (2, 1, 32, 32), jnp.float32)
    fwd = jax.jit(lambda p, xi: lenet_forward(p, xi, num_classes))
    out = jax.block_until_ready(fwd(prepped, x))
    assert out.shape == (2, num_classes)
    assert bool(jnp.all(jnp.isfinite(out)))
    print("KERNEL_OK")
</pallas_src>

<mosaic_0001>
module attributes {stable_mosaic.version = 11 : i64} {
  func.func @_matmul_bias_relu_kernel(%arg0: i32, %arg1: memref<784x25xbf16, #tpu.memory_space<vmem>>, %arg2: memref<25x128xbf16, #tpu.memory_space<vmem>>, %arg3: memref<1x128xf32, #tpu.memory_space<vmem>>, %arg4: memref<784x128xf32, #tpu.memory_space<vmem>>) attributes {dimension_semantics = [#tpu.dimension_semantics<parallel>], iteration_bounds = array<i64: 2>, scalar_prefetch = 0 : i64, scratch_operands = 0 : i64, tpu.core_type = #tpu.core_type<tc>, window_params = [{transform_indices = @transform_0, window_bounds = array<i64: 784, 25>}, {pipeline_mode = #tpu.pipeline_mode<synchronous>, transform_indices = @transform_1, window_bounds = array<i64: 25, 128>}, {pipeline_mode = #tpu.pipeline_mode<synchronous>, transform_indices = @transform_2, window_bounds = array<i64: 1, 128>}, {transform_indices = @transform_3, window_bounds = array<i64: 784, 128>}]} {
    %c0 = arith.constant 0 : index
    %c0_0 = arith.constant 0 : index
    %0 = vector.load %arg1[%c0, %c0_0] : memref<784x25xbf16, #tpu.memory_space<vmem>>, vector<784x25xbf16>
    %c0_1 = arith.constant 0 : index
    %c0_2 = arith.constant 0 : index
    %1 = vector.load %arg2[%c0_1, %c0_2] : memref<25x128xbf16, #tpu.memory_space<vmem>>, vector<25x128xbf16>
    %cst = arith.constant dense<0.000000e+00> : vector<784x128xf32>
    %2 = tpu.matmul %0, %1, %cst {dimension_numbers = #tpu.dot_dimension_numbers<[1], [0], [0], [1], [0, 0, 1, 1], [], []>} : vector<784x25xbf16>, vector<25x128xbf16>, vector<784x128xf32> -> vector<784x128xf32>
    %c0_3 = arith.constant 0 : index
    %c0_4 = arith.constant 0 : index
    %3 = vector.load %arg3[%c0_3, %c0_4] : memref<1x128xf32, #tpu.memory_space<vmem>>, vector<1x128xf32>
    %4 = vector.broadcast %3 : vector<1x128xf32> to vector<784x128xf32>
    %5 = arith.addf %2, %4 : vector<784x128xf32>
    %cst_5 = arith.constant 0.000000e+00 : f32
    %6 = vector.broadcast %cst_5 : f32 to vector<784x128xf32>
    %7 = arith.maximumf %5, %6 : vector<784x128xf32>
    %c0_6 = arith.constant 0 : index
    %c0_7 = arith.constant 0 : index
    %8 = vector.load %arg4[%c0_6, %c0_7] : memref<784x128xf32, #tpu.memory_space<vmem>>, vector<784x128xf32>
    tpu.vector_store %arg4[%c0_6, %c0_7], %7 {strides = array<i32>} : memref<784x128xf32, #tpu.memory_space<vmem>>, vector<784x128xf32>,
    return
  }
  func.func @transform_0(%arg0: i32) -> (i32, i32) {
    %c0_i32 = arith.constant 0 : i32
    %c0_i32_0 = arith.constant 0 : i32
    return %arg0, %c0_i32 : i32, i32
  }
  func.func @transform_1(%arg0: i32) -> (i32, i32) {
    %c0_i32 = arith.constant 0 : i32
    %c0_i32_0 = arith.constant 0 : i32
    %c0_i32_1 = arith.constant 0 : i32
    return %c0_i32, %c0_i32_0 : i32, i32
  }
  func.func @transform_2(%arg0: i32) -> (i32, i32) {
    %c0_i32 = arith.constant 0 : i32
    %c0_i32_0 = arith.constant 0 : i32
    %c0_i32_1 = arith.constant 0 : i32
    return %c0_i32, %c0_i32_0 : i32, i32
  }
  func.func @transform_3(%arg0: i32) -> (i32, i32) {
    %c0_i32 = arith.constant 0 : i32
    %c0_i32_0 = arith.constant 0 : i32
    return %arg0, %c0_i32 : i32, i32
  }
}

module attributes {stable_mosaic.version = 11 : i64} {
  func.func @_max4_kernel(%arg0: memref<392x128xf32, #tpu.memory_space<vmem>>, %arg1: memref<392x128xf32, #tpu.memory_space<vmem>>, %arg2: memref<392x128xf32, #tpu.memory_space<vmem>>, %arg3: memref<392x128xf32, #tpu.memory_space<vmem>>, %arg4: memref<392x128xf32, #tpu.memory_space<vmem>>) attributes {dimension_semantics = [], scalar_prefetch = 0 : i64, scratch_operands = 0 : i64, tpu.core_type = #tpu.core_type<tc>} {
    %c0 = arith.constant 0 : index
    %c0_0 = arith.constant 0 : index
    %0 = vector.load %arg0[%c0, %c0_0] : memref<392x128xf32, #tpu.memory_space<vmem>>, vector<392x128xf32>
    %c0_1 = arith.constant 0 : index
    %c0_2 = arith.constant 0 : index
    %1 = vector.load %arg1[%c0_1, %c0_2] : memref<392x128xf32, #tpu.memory_space<vmem>>, vector<392x128xf32>
    %2 = arith.maximumf %0, %1 : vector<392x128xf32>
    %c0_3 = arith.constant 0 : index
    %c0_4 = arith.constant 0 : index
    %3 = vector.load %arg2[%c0_3, %c0_4] : memref<392x128xf32, #tpu.memory_space<vmem>>, vector<392x128xf32>
    %c0_5 = arith.constant 0 : index
    %c0_6 = arith.constant 0 : index
    %4 = vector.load %arg3[%c0_5, %c0_6] : memref<392x128xf32, #tpu.memory_space<vmem>>, vector<392x128xf32>
    %5 = arith.maximumf %3, %4 : vector<392x128xf32>
    %6 = arith.maximumf %2, %5 : vector<392x128xf32>
    %c0_7 = arith.constant 0 : index
    %c0_8 = arith.constant 0 : index
    %7 = vector.load %arg4[%c0_7, %c0_8] : memref<392x128xf32, #tpu.memory_space<vmem>>, vector<392x128xf32>
    tpu.vector_store %arg4[%c0_7, %c0_8], %6 {strides = array<i32>} : memref<392x128xf32, #tpu.memory_space<vmem>>, vector<392x128xf32>,
    return
  }
}

module attributes {stable_mosaic.version = 11 : i64} {
  func.func @_matmul_bias_relu_kernel(%arg0: i32, %arg1: memref<200x150xbf16, #tpu.memory_space<vmem>>, %arg2: memref<150x128xbf16, #tpu.memory_space<vmem>>, %arg3: memref<1x128xf32, #tpu.memory_space<vmem>>, %arg4: memref<200x128xf32, #tpu.memory_space<vmem>>) attributes {dimension_semantics = [#tpu.dimension_semantics<parallel>], iteration_bounds = array<i64: 1>, scalar_prefetch = 0 : i64, scratch_operands = 0 : i64, tpu.core_type = #tpu.core_type<tc>, window_params = [{transform_indices = @transform_0, window_bounds = array<i64: 200, 150>}, {pipeline_mode = #tpu.pipeline_mode<synchronous>, transform_indices = @transform_1, window_bounds = array<i64: 150, 128>}, {pipeline_mode = #tpu.pipeline_mode<synchronous>, transform_indices = @transform_2, window_bounds = array<i64: 1, 128>}, {transform_indices = @transform_3, window_bounds = array<i64: 200, 128>}]} {
    %c0 = arith.constant 0 : index
    %c0_0 = arith.constant 0 : index
    %0 = vector.load %arg1[%c0, %c0_0] : memref<200x150xbf16, #tpu.memory_space<vmem>>, vector<200x150xbf16>
    %c0_1 = arith.constant 0 : index
    %c0_2 = arith.constant 0 : index
    %1 = vector.load %arg2[%c0_1, %c0_2] : memref<150x128xbf16, #tpu.memory_space<vmem>>, vector<150x128xbf16>
    %cst = arith.constant dense<0.000000e+00> : vector<200x128xf32>
    %2 = tpu.matmul %0, %1, %cst {dimension_numbers = #tpu.dot_dimension_numbers<[1], [0], [0], [1], [0, 0, 1, 1], [], []>} : vector<200x150xbf16>, vector<150x128xbf16>, vector<200x128xf32> -> vector<200x128xf32>
    %c0_3 = arith.constant 0 : index
    %c0_4 = arith.constant 0 : index
    %3 = vector.load %arg3[%c0_3, %c0_4] : memref<1x128xf32, #tpu.memory_space<vmem>>, vector<1x128xf32>
    %4 = vector.broadcast %3 : vector<1x128xf32> to vector<200x128xf32>
    %5 = arith.addf %2, %4 : vector<200x128xf32>
    %cst_5 = arith.constant 0.000000e+00 : f32
    %6 = vector.broadcast %cst_5 : f32 to vector<200x128xf32>
    %7 = arith.maximumf %5, %6 : vector<200x128xf32>
    %c0_6 = arith.constant 0 : index
    %c0_7 = arith.constant 0 : index
    %8 = vector.load %arg4[%c0_6, %c0_7] : memref<200x128xf32, #tpu.memory_space<vmem>>, vector<200x128xf32>
    tpu.vector_store %arg4[%c0_6, %c0_7], %7 {strides = array<i32>} : memref<200x128xf32, #tpu.memory_space<vmem>>, vector<200x128xf32>,
    return
  }
  func.func @transform_0(%arg0: i32) -> (i32, i32) {
    %c0_i32 = arith.constant 0 : i32
    %c0_i32_0 = arith.constant 0 : i32
    return %arg0, %c0_i32 : i32, i32
  }
  func.func @transform_1(%arg0: i32) -> (i32, i32) {
    %c0_i32 = arith.constant 0 : i32
    %c0_i32_0 = arith.constant 0 : i32
    %c0_i32_1 = arith.constant 0 : i32
    return %c0_i32, %c0_i32_0 : i32, i32
  }
  func.func @transform_2(%arg0: i32) -> (i32, i32) {
    %c0_i32 = arith.constant 0 : i32
    %c0_i32_0 = arith.constant 0 : i32
    %c0_i32_1 = arith.constant 0 : i32
    return %c0_i32, %c0_i32_0 : i32, i32
  }
  func.func @transform_3(%arg0: i32) -> (i32, i32) {
    %c0_i32 = arith.constant 0 : i32
    %c0_i32_0 = arith.constant 0 : i32
    return %arg0, %c0_i32 : i32, i32
  }
}

module attributes {stable_mosaic.version = 11 : i64} {
  func.func @_max4_kernel(%arg0: memref<50x128xf32, #tpu.memory_space<vmem>>, %arg1: memref<50x128xf32, #tpu.memory_space<vmem>>, %arg2: memref<50x128xf32, #tpu.memory_space<vmem>>, %arg3: memref<50x128xf32, #tpu.memory_space<vmem>>, %arg4: memref<50x128xf32, #tpu.memory_space<vmem>>) attributes {dimension_semantics = [], scalar_prefetch = 0 : i64, scratch_operands = 0 : i64, tpu.core_type = #tpu.core_type<tc>} {
    %c0 = arith.constant 0 : index
    %c0_0 = arith.constant 0 : index
    %0 = vector.load %arg0[%c0, %c0_0] : memref<50x128xf32, #tpu.memory_space<vmem>>, vector<50x128xf32>
    %c0_1 = arith.constant 0 : index
    %c0_2 = arith.constant 0 : index
    %1 = vector.load %arg1[%c0_1, %c0_2] : memref<50x128xf32, #tpu.memory_space<vmem>>, vector<50x128xf32>
    %2 = arith.maximumf %0, %1 : vector<50x128xf32>
    %c0_3 = arith.constant 0 : index
    %c0_4 = arith.constant 0 : index
    %3 = vector.load %arg2[%c0_3, %c0_4] : memref<50x128xf32, #tpu.memory_space<vmem>>, vector<50x128xf32>
    %c0_5 = arith.constant 0 : index
    %c0_6 = arith.constant 0 : index
    %4 = vector.load %arg3[%c0_5, %c0_6] : memref<50x128xf32, #tpu.memory_space<vmem>>, vector<50x128xf32>
    %5 = arith.maximumf %3, %4 : vector<50x128xf32>
    %6 = arith.maximumf %2, %5 : vector<50x128xf32>
    %c0_7 = arith.constant 0 : index
    %c0_8 = arith.constant 0 : index
    %7 = vector.load %arg4[%c0_7, %c0_8] : memref<50x128xf32, #tpu.memory_space<vmem>>, vector<50x128xf32>
    tpu.vector_store %arg4[%c0_7, %c0_8], %6 {strides = array<i32>} : memref<50x128xf32, #tpu.memory_space<vmem>>, vector<50x128xf32>,
    return
  }
}

module attributes {stable_mosaic.version = 11 : i64} {
  func.func @_classifier_tail_kernel(%arg0: memref<2x400xbf16, #tpu.memory_space<vmem>>, %arg1: memref<400x128xbf16, #tpu.memory_space<vmem>>, %arg2: memref<1x128xf32, #tpu.memory_space<vmem>>, %arg3: memref<128x128xbf16, #tpu.memory_space<vmem>>, %arg4: memref<1x128xf32, #tpu.memory_space<vmem>>, %arg5: memref<128x128xbf16, #tpu.memory_space<vmem>>, %arg6: memref<1x128xf32, #tpu.memory_space<vmem>>, %arg7: memref<2x128xf32, #tpu.memory_space<vmem>>) attributes {dimension_semantics = [], scalar_prefetch = 0 : i64, scratch_operands = 0 : i64, tpu.core_type = #tpu.core_type<tc>} {
    %c0 = arith.constant 0 : index
    %c0_0 = arith.constant 0 : index
    %0 = vector.load %arg0[%c0, %c0_0] : memref<2x400xbf16, #tpu.memory_space<vmem>>, vector<2x400xbf16>
    %c0_1 = arith.constant 0 : index
    %c0_2 = arith.constant 0 : index
    %1 = vector.load %arg1[%c0_1, %c0_2] : memref<400x128xbf16, #tpu.memory_space<vmem>>, vector<400x128xbf16>
    %cst = arith.constant dense<0.000000e+00> : vector<2x128xf32>
    %2 = tpu.matmul %0, %1, %cst {dimension_numbers = #tpu.dot_dimension_numbers<[1], [0], [0], [1], [0, 0, 1, 1], [], []>} : vector<2x400xbf16>, vector<400x128xbf16>, vector<2x128xf32> -> vector<2x128xf32>
    %c0_3 = arith.constant 0 : index
    %c0_4 = arith.constant 0 : index
    %3 = vector.load %arg2[%c0_3, %c0_4] : memref<1x128xf32, #tpu.memory_space<vmem>>, vector<1x128xf32>
    %4 = vector.broadcast %3 : vector<1x128xf32> to vector<2x128xf32>
    %5 = arith.addf %2, %4 : vector<2x128xf32>
    %cst_5 = arith.constant 0.000000e+00 : f32
    %6 = vector.broadcast %cst_5 : f32 to vector<2x128xf32>
    %7 = arith.maximumf %5, %6 : vector<2x128xf32>
    %8 = arith.truncf %7 : vector<2x128xf32> to vector<2x128xbf16>
    %c0_6 = arith.constant 0 : index
    %c0_7 = arith.constant 0 : index
    %9 = vector.load %arg3[%c0_6, %c0_7] : memref<128x128xbf16, #tpu.memory_space<vmem>>, vector<128x128xbf16>
    %cst_8 = arith.constant dense<0.000000e+00> : vector<2x128xf32>
    %10 = tpu.matmul %8, %9, %cst_8 {dimension_numbers = #tpu.dot_dimension_numbers<[1], [0], [0], [1], [0, 0, 1, 1], [], []>} : vector<2x128xbf16>, vector<128x128xbf16>, vector<2x128xf32> -> vector<2x128xf32>
    %c0_9 = arith.constant 0 : index
    %c0_10 = arith.constant 0 : index
    %11 = vector.load %arg4[%c0_9, %c0_10] : memref<1x128xf32, #tpu.memory_space<vmem>>, vector<1x128xf32>
    %12 = vector.broadcast %11 : vector<1x128xf32> to vector<2x128xf32>
    %13 = arith.addf %10, %12 : vector<2x128xf32>
    %cst_11 = arith.constant 0.000000e+00 : f32
    %14 = vector.broadcast %cst_11 : f32 to vector<2x128xf32>
    %15 = arith.maximumf %13, %14 : vector<2x128xf32>
    %16 = arith.truncf %15 : vector<2x128xf32> to vector<2x128xbf16>
    %c0_12 = arith.constant 0 : index
    %c0_13 = arith.constant 0 : index
    %17 = vector.load %arg5[%c0_12, %c0_13] : memref<128x128xbf16, #tpu.memory_space<vmem>>, vector<128x128xbf16>
    %cst_14 = arith.constant dense<0.000000e+00> : vector<2x128xf32>
    %18 = tpu.matmul %16, %17, %cst_14 {dimension_numbers = #tpu.dot_dimension_numbers<[1], [0], [0], [1], [0, 0, 1, 1], [], []>} : vector<2x128xbf16>, vector<128x128xbf16>, vector<2x128xf32> -> vector<2x128xf32>
    %c0_15 = arith.constant 0 : index
    %c0_16 = arith.constant 0 : index
    %19 = vector.load %arg6[%c0_15, %c0_16] : memref<1x128xf32, #tpu.memory_space<vmem>>, vector<1x128xf32>
    %20 = vector.broadcast %19 : vector<1x128xf32> to vector<2x128xf32>
    %21 = arith.addf %18, %20 : vector<2x128xf32>
    %c0_17 = arith.constant 0 : index
    %c0_18 = arith.constant 0 : index
    %22 = vector.load %arg7[%c0_17, %c0_18] : memref<2x128xf32, #tpu.memory_space<vmem>>, vector<2x128xf32>
    tpu.vector_store %arg7[%c0_17, %c0_18], %21 {strides = array<i32>} : memref<2x128xf32, #tpu.memory_space<vmem>>, vector<2x128xf32>,
    return
  }
}

</mosaic_0001>

<bundles_post_ra>
// kernel: _lambda_.5
= control target key start
LH: loop header
LB: loop body
LE: loop exit
PB: predicated region body
PF: predicated region fallthrough
CT: control target
= control target key end

     0   :  { %s1556_s12 = smov 0   ;;  %s1889_s0 = inlined_call_operand.vmem [shape: bf16[1568,25], index: 0, kind: input, shape index: {}]   ;;  %s1890_s1 = inlined_call_operand.vmem [shape: bf16[25,128], index: 1, kind: input, shape index: {}]   ;;  %s1891_s2 = inlined_call_operand.vmem [shape: f32[1,128], index: 2, kind: input, shape index: {}]   ;;  %s1892_s3 = inlined_call_operand.vmem [shape: f32[1568,128], index: 3, kind: output, shape index: {}]  }
   0x1 LB: > { %s1198_s13 = sadd.s32 4294967295, %s1533_s12   ;;  %p1202_p0 = scmp.ge.s32.totalorder %s1533_s12, 1  ;;  %s1533_s12 = sphi %s1556_s12, %s13_s12  }
   0x2   : > { %p138_p1 = scmp.lt.s32.totalorder %s1533_s12, 3 }
   0x4   : > { %p139_p2 = pnand %p1202_p0, %p138_p1 }
   0x5   : > { %s162_s18 = smul.u32 (!%p139_p2), 98, %s1198_s13 }
   0x6   : > { %142 = sbr.rel (%p139_p2) target bundleno = 361 (0x169), region = 32 }
   0x7   : > { %p163_p3 = scmp.lt.s32.totalorder (!%p139_p2), %s162_s18, 195 }
   0xb   : > { %v1407_v0 = vld [vmem:[%s1890_s1 + $0x8] sm:$0xf]  ;;  %v1510_v1 = vld [vmem:[%s1890_s1 + $0x8] sm:$0x10]  ;;  %vm685_vm0 = vcmask 1043456   ;;  %vm686_vm1 = vcmask 1044480  }
   0xc   : > { %v1408_v2 = vor.u32 %v1510_v1, %v1407_v0  ;;  %v1535_v3 = vmov 65535   ;;  %s1894_s18 = smov (!%p163_p3, %s162_s18), 195  ;;  %v1509_v7 = vld [vmem:[%s1890_s1] sm:$0xff]  ;;  %vm537_vm2 = vcmask 203776  }
   0xd   : > { %v687_v4 = vsel %vm685_vm0, 4294967295, %v1535_v3  ;;  %s1203_s21 = sshll.u32 %s1894_s18, 2  ;;  %v1648_v40 = vld [vmem:[%s1891_s2] ss:$0 sm:$0xff]  ;;  %s1204_s27 = sshll.u32 %s1894_s18, 3 }
   0xe   : > { %v688_v5 = vsel %vm686_vm1, %v687_v4, 0  ;;  %s1579_s24 = scalar_lea.vmem %s1889_s0, %s1203_s21  ;;  %s1659_s30 = scalar_lea.vmem %s1892_s3, %s1204_s27 }
   0xf   : > { %v690_v6 = vand.u32 %v1408_v2, %v688_v5  ;;  %v1472_v8 = vld [vmem:[%s1579_s24 + $0x60] sm:$0xff]  ;;  %v1485_v9 = vld [vmem:[%s1579_s24 + $0xc8] sm:$0xff]  ;;  %v1498_v11 = vld [vmem:[%s1579_s24 + $0x130] sm:$0xff] }
  0x10   : > { %v1460_v10 = vld [vmem:[%s1579_s24] sm:$0xff]  ;;  %v1473_v12 = vld [vmem:[%s1579_s24 + $0x68] sm:$0xff]  ;;  %v1486_v13 = vld [vmem:[%s1579_s24 + $0xd0] sm:$0xff] }
  0x11   : > { %1511 = vmatpush.bf16.msra.mxu1 %v690_v6  ;;  %1512 = vmatpush.bf16.msra.mxu2 %v690_v6  ;;  %v1461_v14 = vld [vmem:[%s1579_s24 + $0x8] sm:$0xff]  ;;  %v1499_v15 = vld [vmem:[%s1579_s24 + $0x138] sm:$0xff]  ;;  %v1474_v16 = vld [vmem:[%s1579_s24 + $0x70] sm:$0xff] }
  0x12   : > { %698 = vmatpush.bf16.msra.mxu0 %v690_v6  ;;  %1513 = vmatpush.bf16.msra.mxu3 %v690_v6  ;;  %v1487_v17 = vld [vmem:[%s1579_s24 + $0xd8] sm:$0xff]  ;;  %v1462_v18 = vld [vmem:[%s1579_s24 + $0x10] sm:$0xff]  ;;  %v1500_v19 = vld [vmem:[%s1579_s24 + $0x140] sm:$0xff] }
  0x13   : > { %v1475_v20 = vld [vmem:[%s1579_s24 + $0x78] sm:$0xff]  ;;  %v1488_v21 = vld [vmem:[%s1579_s24 + $0xe0] sm:$0xff]  ;;  %v1501_v23 = vld [vmem:[%s1579_s24 + $0x148] sm:$0xff] }
  0x14   : > { %v1463_v22 = vld [vmem:[%s1579_s24 + $0x18] sm:$0xff]  ;;  %v1476_v24 = vld [vmem:[%s1579_s24 + $0x80] sm:$0xff]  ;;  %v1489_v25 = vld [vmem:[%s1579_s24 + $0xe8] sm:$0xff] }
  0x15   : > { %1514 = vmatpush.bf16.msra.mxu1 %v1509_v7  ;;  %1515 = vmatpush.bf16.msra.mxu2 %v1509_v7  ;;  %v1464_v26 = vld [vmem:[%s1579_s24 + $0x20] sm:$0xff]  ;;  %v1502_v27 = vld [vmem:[%s1579_s24 + $0x150] sm:$0xff]  ;;  %v1477_v28 = vld [vmem:[%s1579_s24 + $0x88] sm:$0xff] }
  0x16   : > { %699 = vmatpush.bf16.msra.mxu0 %v1509_v7  ;;  %1516 = vmatpush.bf16.msra.mxu3 %v1509_v7  ;;  %v1490_v29 = vld [vmem:[%s1579_s24 + $0xf0] sm:$0xff]  ;;  %v1465_v30 = vld [vmem:[%s1579_s24 + $0x28] sm:$0xff]  ;;  %v1503_v31 = vld [vmem:[%s1579_s24 + $0x158] sm:$0xff] }
  0x17   : > { %v1478_v32 = vld [vmem:[%s1579_s24 + $0x90] sm:$0xff]  ;;  %v1491_v33 = vld [vmem:[%s1579_s24 + $0xf8] sm:$0xff]  ;;  %v1504_v35 = vld [vmem:[%s1579_s24 + $0x160] sm:$0xff] }
  0x18   : > { %1421 = vmatmul.msk.bf16.vlgmr.msra.gmra.mxu1 %vm537_vm2, %v1472_v8  ;;  %1434 = vmatmul.msk.bf16.vlgmr.msra.gmra.mxu2 %vm537_vm2, %v1485_v9  ;;  %v1466_v34 = vld [vmem:[%s1579_s24 + $0x30] sm:$0xff]  ;;  %v1479_v36 = vld [vmem:[%s1579_s24 + $0x98] sm:$0xff]  ;;  %v1492_v37 = vld [vmem:[%s1579_s24 + $0x100] sm:$0xff] }
  0x19   : > { %1409 = vmatmul.msk.bf16.vlgmr.msra.gmra.mxu0 %vm537_vm2, %v1460_v10  ;;  %1447 = vmatmul.msk.bf16.vlgmr.msra.gmra.mxu3 %vm537_vm2, %v1498_v11  ;;  %v1467_v38 = vld [vmem:[%s1579_s24 + $0x38] sm:$0xff]  ;;  %v1505_v39 = vld [vmem:[%s1579_s24 + $0x168] sm:$0xff]  ;;  %v1480_v41 = vld [vmem:[%s1579_s24 + $0xa0] sm:$0xff] }
  0x1a   : > { %v1493_v42 = vld [vmem:[%s1579_s24 + $0x108] sm:$0xff]  ;;  %v1468_v44 = vld [vmem:[%s1579_s24 + $0x40] sm:$0xff]  ;;  %v1506_v45 = vld [vmem:[%s1579_s24 + $0x170] sm:$0xff] }
  0x1b   : > { %v1481_v1 = vld [vmem:[%s1579_s24 + $0xa8] sm:$0xff]  ;;  %v1494_v2 = vld [vmem:[%s1579_s24 + $0x110] sm:$0xff]  ;;  %v1507_v7 = vld [vmem:[%s1579_s24 + $0x178] sm:$0xff] }
  0x1c   : > { %v1469_v5 = vld [vmem:[%s1579_s24 + $0x48] sm:$0xff] }
  0x28   : > { %1422 = vmatmul.msk.bf16.gmra.mxu1 %vm537_vm2, %v1473_v12  ;;  %1435 = vmatmul.msk.bf16.gmra.mxu2 %vm537_vm2, %v1486_v13 }
  0x29   : > { %1410 = vmatmul.msk.bf16.gmra.mxu0 %vm537_vm2, %v1461_v14  ;;  %1448 = vmatmul.msk.bf16.gmra.mxu3 %vm537_vm2, %v1499_v15 }
  0x38   : > { %1423 = vmatmul.msk.bf16.gmra.mxu1 %vm537_vm2, %v1474_v16  ;;  %1436 = vmatmul.msk.bf16.gmra.mxu2 %vm537_vm2, %v1487_v17 }
  0x39   : > { %1411 = vmatmul.msk.bf16.gmra.mxu0 %vm537_vm2, %v1462_v18  ;;  %1449 = vmatmul.msk.bf16.gmra.mxu3 %vm537_vm2, %v1500_v19 }
  0x48   : > { %1424 = vmatmul.msk.bf16.gmra.mxu1 %vm537_vm2, %v1475_v20  ;;  %1437 = vmatmul.msk.bf16.gmra.mxu2 %vm537_vm2, %v1488_v21 }
  0x49   : > { %1412 = vmatmul.msk.bf16.gmra.mxu0 %vm537_vm2, %v1463_v22  ;;  %1450 = vmatmul.msk.bf16.gmra.mxu3 %vm537_vm2, %v1501_v23 }
  0x58   : > { %1425 = vmatmul.msk.bf16.gmra.mxu1 %vm537_vm2, %v1476_v24  ;;  %1438 = vmatmul.msk.bf16.gmra.mxu2 %vm537_vm2, %v1489_v25 }
  0x59   : > { %1413 = vmatmul.msk.bf16.gmra.mxu0 %vm537_vm2, %v1464_v26  ;;  %1451 = vmatmul.msk.bf16.gmra.mxu3 %vm537_vm2, %v1502_v27 }
  0x68   : > { %1426 = vmatmul.msk.bf16.gmra.mxu1 %vm537_vm2, %v1477_v28  ;;  %1439 = vmatmul.msk.bf16.gmra.mxu2 %vm537_vm2, %v1490_v29  ;;  %v1482_v29 = vld [vmem:[%s1579_s24 + $0xb0] sm:$0xff] }
  0x69   : > { %1414 = vmatmul.msk.bf16.gmra.mxu0 %vm537_vm2, %v1465_v30  ;;  %1452 = vmatmul.msk.bf16.gmra.mxu3 %vm537_vm2, %v1503_v31  ;;  %v1495_v30 = vld [vmem:[%s1579_s24 + $0x118] sm:$0xff] }
  0x78   : > { %1427 = vmatmul.msk.bf16.gmra.mxu1 %vm537_vm2, %v1478_v32  ;;  %1440 = vmatmul.msk.bf16.gmra.mxu2 %vm537_vm2, %v1491_v33  ;;  %v1470_v33 = vld [vmem:[%s1579_s24 + $0x50] sm:$0xff] }
  0x79   : > { %1415 = vmatmul.msk.bf16.gmra.mxu0 %vm537_vm2, %v1466_v34  ;;  %1453 = vmatmul.msk.bf16.gmra.mxu3 %vm537_vm2, %v1504_v35  ;;  %v1508_v35 = vld [vmem:[%s1579_s24 + $0x180] sm:$0xff] }
  0x88   : > { %1428 = vmatmul.msk.bf16.gmra.mxu1 %vm537_vm2, %v1479_v36  ;;  %1441 = vmatmul.msk.bf16.gmra.mxu2 %vm537_vm2, %v1492_v37 }
  0x89   : > { %1416 = vmatmul.msk.bf16.gmra.mxu0 %vm537_vm2, %v1467_v38  ;;  %1454 = vmatmul.msk.bf16.gmra.mxu3 %vm537_vm2, %v1505_v39 }
  0x95   : > { %v761_v43 = vpop.f32.mrf.mxu1 }
  0x96   : > { %v762_v46 = vadd.f32 %v1648_v40, %v761_v43  ;;  %v701_v47 = vpop.f32.mrf.mxu0 }
  0x97   : > { %v702_v48 = vadd.f32 %v1648_v40, %v701_v47 }
  0x98   : > { %v970_v49 = vmax.f32 %v762_v46, 0.0  ;;  %1429 = vmatmul.msk.bf16.gmra.mxu1 %vm537_vm2, %v1480_v41  ;;  %1442 = vmatmul.msk.bf16.gmra.mxu2 %vm537_vm2, %v1493_v42 }
  0x99   : > { %v946_v50 = vmax.f32 %v702_v48, 0.0  ;;  %1417 = vmatmul.msk.bf16.gmra.mxu0 %vm537_vm2, %v1468_v44  ;;  %1455 = vmatmul.msk.bf16.gmra.mxu3 %vm537_vm2, %v1506_v45 }
  0x9a   : > { %1068 = vst [vmem:[%s1659_s30 + $0xc0] sm:$0xff] %v970_v49 }
  0x9b   : > { %v826_v51 = vpop.f32.mrf.mxu2  ;;  %1044 = vst [vmem:[%s1659_s30] sm:$0xff] %v946_v50 }
  0x9c   : > { %v827_v52 = vadd.f32 %v1648_v40, %v826_v51  ;;  %v891_v53 = vpop.f32.mrf.mxu3 }
  0x9d   : > { %v763_v54 = vpop.f32.mrf.mxu1  ;;  %v892_v55 = vadd.f32 %v1648_v40, %v891_v53 }
  0x9e   : > { %v996_v56 = vmax.f32 %v827_v52, 0.0  ;;  %v764_v57 = vadd.f32 %v1648_v40, %v763_v54  ;;  %v703_v58 = vpop.f32.mrf.mxu0 }
  0x9f   : > { %v704_v59 = vadd.f32 %v1648_v40, %v703_v58  ;;  %v1022_v60 = vmax.f32 %v892_v55, 0.0  ;;  %v1483_v58 = vld [vmem:[%s1579_s24 + $0xb8] sm:$0xff] }
  0xa0   : > { %1094 = vst [vmem:[%s1659_s30 + $0x190] sm:$0xff] %v996_v56  ;;  %v971_v61 = vmax.f32 %v764_v57, 0.0 }
  0xa1   : > { %v947_v62 = vmax.f32 %v704_v59, 0.0  ;;  %1120 = vst [vmem:[%s1659_s30 + $0x260] sm:$0xff] %v1022_v60  ;;  %v1496_v59 = vld [vmem:[%s1579_s24 + $0x120] sm:$0xff] }
  0xa2   : > { %1069 = vst [vmem:[%s1659_s30 + $0xc8] sm:$0xff] %v971_v61 }
  0xa3   : > { %v828_v63 = vpop.f32.mrf.mxu2  ;;  %1045 = vst [vmem:[%s1659_s30 + $0x8] sm:$0xff] %v947_v62  ;;  %v1471_v62 = vld [vmem:[%s1579_s24 + $0x58] sm:$0xff] }
  0xa4   : > { %v829_v0 = vadd.f32 %v1648_v40, %v828_v63  ;;  %v893_v3 = vpop.f32.mrf.mxu3 }
  0xa5   : > { %v766_v4 = vpop.f32.mrf.mxu1  ;;  %v894_v6 = vadd.f32 %v1648_v40, %v893_v3 }
  0xa6   : > { %v997_v8 = vmax.f32 %v829_v0, 0.0  ;;  %v767_v9 = vadd.f32 %v1648_v40, %v766_v4  ;;  %v706_v10 = vpop.f32.mrf.mxu0 }
  0xa7   : > { %v707_v11 = vadd.f32 %v1648_v40, %v706_v10  ;;  %v1023_v12 = vmax.f32 %v894_v6, 0.0 }
  0xa8   : > { %1095 = vst [vmem:[%s1659_s30 + $0x198] sm:$0xff] %v997_v8  ;;  %v972_v13 = vmax.f32 %v767_v9, 0.0  ;;  %1430 = vmatmul.msk.bf16.gmra.mxu1 %vm537_vm2, %v1481_v1  ;;  %1443 = vmatmul.msk.bf16.gmra.mxu2 %vm537_vm2, %v1494_v2 }
  0xa9   : > { %v948_v14 = vmax.f32 %v707_v11, 0.0  ;;  %1418 = vmatmul.msk.bf16.gmra.mxu0 %vm537_vm2, %v1469_v5  ;;  %1121 = vst [vmem:[%s1659_s30 + $0x268] sm:$0xff] %v1023_v12  ;;  %1456 = vmatmul.msk.bf16.gmra.mxu3 %vm537_vm2, %v1507_v7 }
  0xaa   : > { %1070 = vst [vmem:[%s1659_s30 + $0xd0] sm:$0xff] %v972_v13 }
  0xab   : > { %v831_v15 = vpop.f32.mrf.mxu2  ;;  %1046 = vst [vmem:[%s1659_s30 + $0x10] sm:$0xff] %v948_v14 }
  0xac   : > { %v832_v16 = vadd.f32 %v1648_v40, %v831_v15  ;;  %v896_v17 = vpop.f32.mrf.mxu3 }
  0xad   : > { %v768_v18 = vpop.f32.mrf.mxu1  ;;  %v897_v19 = vadd.f32 %v1648_v40, %v896_v17 }
  0xae   : > { %v998_v20 = vmax.f32 %v832_v16, 0.0  ;;  %v769_v21 = vadd.f32 %v1648_v40, %v768_v18  ;;  %v708_v22 = vpop.f32.mrf.mxu0 }
  0xaf   : > { %v709_v23 = vadd.f32 %v1648_v40, %v708_v22  ;;  %v1024_v24 = vmax.f32 %v897_v19, 0.0  ;;  %v1497_v22 = vld [vmem:[%s1579_s24 + $0x128] sm:$0xff] }
  0xb0   : > { %1096 = vst [vmem:[%s1659_s30 + $0x1a0] sm:$0xff] %v998_v20  ;;  %v973_v25 = vmax.f32 %v769_v21, 0.0  ;;  %v1484_v21 = vld [vmem:[%s1579_s24 + $0xc0] sm:$0xff] }
  0xb1   : > { %v949_v26 = vmax.f32 %v709_v23, 0.0  ;;  %1122 = vst [vmem:[%s1659_s30 + $0x270] sm:$0xff] %v1024_v24 }
  0xb2   : > { %1071 = vst [vmem:[%s1659_s30 + $0xd8] sm:$0xff] %v973_v25 }
  0xb3   : > { %v833_v27 = vpop.f32.mrf.mxu2  ;;  %1047 = vst [vmem:[%s1659_s30 + $0x18] sm:$0xff] %v949_v26 }
  0xb4   : > { %v834_v28 = vadd.f32 %v1648_v40, %v833_v27  ;;  %v898_v31 = vpop.f32.mrf.mxu3 }
  0xb5   : > { %v771_v32 = vpop.f32.mrf.mxu1  ;;  %v899_v34 = vadd.f32 %v1648_v40, %v898_v31 }
  0xb6   : > { %v999_v36 = vmax.f32 %v834_v28, 0.0  ;;  %v772_v37 = vadd.f32 %v1648_v40, %v771_v32  ;;  %v711_v38 = vpop.f32.mrf.mxu0 }
  0xb7   : > { %v712_v39 = vadd.f32 %v1648_v40, %v711_v38  ;;  %v1025_v41 = vmax.f32 %v899_v34, 0.0 }
  0xb8   : > { %1097 = vst [vmem:[%s1659_s30 + $0x1a8] sm:$0xff] %v999_v36  ;;  %v974_v42 = vmax.f32 %v772_v37, 0.0  ;;  %1431 = vmatmul.msk.bf16.gmra.mxu1 %vm537_vm2, %v1482_v29  ;;  %1444 = vmatmul.msk.bf16.gmra.mxu2 %vm537_vm2, %v1495_v30 }
  0xb9   : > { %v950_v43 = vmax.f32 %v712_v39, 0.0  ;;  %1419 = vmatmul.msk.bf16.gmra.mxu0 %vm537_vm2, %v1470_v33  ;;  %1123 = vst [vmem:[%s1659_s30 + $0x278] sm:$0xff] %v1025_v41  ;;  %1457 = vmatmul.msk.bf16.gmra.mxu3 %vm537_vm2, %v1508_v35 }
  0xba   : > { %1072 = vst [vmem:[%s1659_s30 + $0xe0] sm:$0xff] %v974_v42 }
  0xbb   : > { %v836_v44 = vpop.f32.mrf.mxu2  ;;  %1048 = vst [vmem:[%s1659_s30 + $0x20] sm:$0xff] %v950_v43 }
  0xbc   : > { %v837_v45 = vadd.f32 %v1648_v40, %v836_v44  ;;  %v901_v46 = vpop.f32.mrf.mxu3 }
  0xbd   : > { %v773_v47 = vpop.f32.mrf.mxu1  ;;  %v902_v48 = vadd.f32 %v1648_v40, %v901_v46 }
  0xbe   : > { %v1000_v49 = vmax.f32 %v837_v45, 0.0  ;;  %v774_v50 = vadd.f32 %v1648_v40, %v773_v47  ;;  %v713_v51 = vpop.f32.mrf.mxu0 }
  0xbf   : > { %v714_v52 = vadd.f32 %v1648_v40, %v713_v51  ;;  %v1026_v53 = vmax.f32 %v902_v48, 0.0 }
  0xc0   : > { %1098 = vst [vmem:[%s1659_s30 + $0x1b0] sm:$0xff] %v1000_v49  ;;  %v975_v54 = vmax.f32 %v774_v50, 0.0 }
  0xc1   : > { %v951_v55 = vmax.f32 %v714_v52, 0.0  ;;  %1124 = vst [vmem:[%s1659_s30 + $0x280] sm:$0xff] %v1026_v53 }
  0xc2   : > { %1073 = vst [vmem:[%s1659_s30 + $0xe8] sm:$0xff] %v975_v54 }
  0xc3   : > { %v838_v56 = vpop.f32.mrf.mxu2  ;;  %1049 = vst [vmem:[%s1659_s30 + $0x28] sm:$0xff] %v951_v55 }
  0xc4   : > { %v839_v57 = vadd.f32 %v1648_v40, %v838_v56  ;;  %v903_v60 = vpop.f32.mrf.mxu3 }
  0xc5   : > { %v776_v61 = vpop.f32.mrf.mxu1  ;;  %v904_v63 = vadd.f32 %v1648_v40, %v903_v60 }
  0xc6   : > { %v1001_v0 = vmax.f32 %v839_v57, 0.0  ;;  %v777_v1 = vadd.f32 %v1648_v40, %v776_v61  ;;  %v716_v2 = vpop.f32.mrf.mxu0 }
  0xc7   : > { %v717_v3 = vadd.f32 %v1648_v40, %v716_v2  ;;  %v1027_v4 = vmax.f32 %v904_v63, 0.0 }
  0xc8   : > { %1099 = vst [vmem:[%s1659_s30 + $0x1b8] sm:$0xff] %v1001_v0  ;;  %v976_v5 = vmax.f32 %v777_v1, 0.0  ;;  %1432 = vmatmul.msk.bf16.gmra.mxu1 %vm537_vm2, %v1483_v58  ;;  %1445 = vmatmul.msk.bf16.gmra.mxu2 %vm537_vm2, %v1496_v59 }
  0xc9   : > { %v952_v6 = vmax.f32 %v717_v3, 0.0  ;;  %1420 = vmatmul.msk.bf16.gmra.mxu0 %vm537_vm2, %v1471_v62  ;;  %1125 = vst [vmem:[%s1659_s30 + $0x288] sm:$0xff] %v1027_v4 }
  0xca   : > { %1074 = vst [vmem:[%s1659_s30 + $0xf0] sm:$0xff] %v976_v5 }
  0xcb   : > { %v841_v7 = vpop.f32.mrf.mxu2  ;;  %1050 = vst [vmem:[%s1659_s30 + $0x30] sm:$0xff] %v952_v6 }
  0xcc   : > { %v842_v8 = vadd.f32 %v1648_v40, %v841_v7  ;;  %v906_v9 = vpop.f32.mrf.mxu3 }
  0xcd   : > { %v778_v10 = vpop.f32.mrf.mxu1  ;;  %v907_v11 = vadd.f32 %v1648_v40, %v906_v9 }
  0xce   : > { %v1002_v12 = vmax.f32 %v842_v8, 0.0  ;;  %v779_v13 = vadd.f32 %v1648_v40, %v778_v10  ;;  %v718_v14 = vpop.f32.mrf.mxu0 }
  0xcf   : > { %v719_v15 = vadd.f32 %v1648_v40, %v718_v14  ;;  %v1028_v16 = vmax.f32 %v907_v11, 0.0 }
  0xd0   : > { %1100 = vst [vmem:[%s1659_s30 + $0x1c0] sm:$0xff] %v1002_v12  ;;  %v977_v17 = vmax.f32 %v779_v13, 0.0 }
  0xd1   : > { %v953_v18 = vmax.f32 %v719_v15, 0.0  ;;  %1126 = vst [vmem:[%s1659_s30 + $0x290] sm:$0xff] %v1028_v16 }
  0xd2   : > { %1075 = vst [vmem:[%s1659_s30 + $0xf8] sm:$0xff] %v977_v17 }
  0xd3   : > { %v843_v19 = vpop.f32.mrf.mxu2  ;;  %1051 = vst [vmem:[%s1659_s30 + $0x38] sm:$0xff] %v953_v18 }
  0xd4   : > { %v844_v20 = vadd.f32 %v1648_v40, %v843_v19  ;;  %v908_v23 = vpop.f32.mrf.mxu3 }
  0xd5   : > { %v781_v24 = vpop.f32.mrf.mxu1  ;;  %v909_v25 = vadd.f32 %v1648_v40, %v908_v23 }
  0xd6   : > { %v1003_v26 = vmax.f32 %v844_v20, 0.0  ;;  %v782_v27 = vadd.f32 %v1648_v40, %v781_v24  ;;  %v721_v28 = vpop.f32.mrf.mxu0 }
  0xd7   : > { %v722_v29 = vadd.f32 %v1648_v40, %v721_v28  ;;  %v1029_v30 = vmax.f32 %v909_v25, 0.0 }
  0xd8   : > { %1101 = vst [vmem:[%s1659_s30 + $0x1c8] sm:$0xff] %v1003_v26  ;;  %v978_v31 = vmax.f32 %v782_v27, 0.0  ;;  %1433 = vmatmul.msk.bf16.gmra.mxu1 %vm537_vm2, %v1484_v21  ;;  %1446 = vmatmul.msk.bf16.gmra.mxu2 %vm537_vm2, %v1497_v22 }
  0xd9   : > { %v954_v32 = vmax.f32 %v722_v29, 0.0  ;;  %1127 = vst [vmem:[%s1659_s30 + $0x298] sm:$0xff] %v1029_v30 }
  0xda   : > { %1076 = vst [vmem:[%s1659_s30 + $0x100] sm:$0xff] %v978_v31 }
  0xdb   : > { %v846_v33 = vpop.f32.mrf.mxu2  ;;  %1052 = vst [vmem:[%s1659_s30 + $0x40] sm:$0xff] %v954_v32 }
  0xdc   : > { %v847_v34 = vadd.f32 %v1648_v40, %v846_v33  ;;  %v911_v35 = vpop.f32.mrf.mxu3 }
  0xdd   : > { %v783_v36 = vpop.f32.mrf.mxu1  ;;  %v912_v37 = vadd.f32 %v1648_v40, %v911_v35 }
  0xde   : > { %v1004_v38 = vmax.f32 %v847_v34, 0.0  ;;  %v784_v39 = vadd.f32 %v1648_v40, %v783_v36  ;;  %v723_v41 = vpop.f32.mrf.mxu0 }
  0xdf   : > { %v724_v42 = vadd.f32 %v1648_v40, %v723_v41  ;;  %v1030_v43 = vmax.f32 %v912_v37, 0.0 }
  0xe0   : > { %1102 = vst [vmem:[%s1659_s30 + $0x1d0] sm:$0xff] %v1004_v38  ;;  %v979_v44 = vmax.f32 %v784_v39, 0.0 }
  0xe1   : > { %v955_v45 = vmax.f32 %v724_v42, 0.0  ;;  %1128 = vst [vmem:[%s1659_s30 + $0x2a0] sm:$0xff] %v1030_v43 }
  0xe2   : > { %1077 = vst [vmem:[%s1659_s30 + $0x108] sm:$0xff] %v979_v44 }
  0xe3   : > { %v848_v46 = vpop.f32.mrf.mxu2  ;;  %1053 = vst [vmem:[%s1659_s30 + $0x48] sm:$0xff] %v955_v45 }
  0xe4   : > { %v849_v47 = vadd.f32 %v1648_v40, %v848_v46  ;;  %v913_v48 = vpop.f32.mrf.mxu3 }
  0xe5   : > { %v786_v49 = vpop.f32.mrf.mxu1  ;;  %v914_v50 = vadd.f32 %v1648_v40, %v913_v48 }
  0xe6   : > { %v1005_v51 = vmax.f32 %v849_v47, 0.0  ;;  %v787_v52 = vadd.f32 %v1648_v40, %v786_v49  ;;  %v726_v53 = vpop.f32.mrf.mxu0 }
  0xe7   : > { %v727_v54 = vadd.f32 %v1648_v40, %v726_v53  ;;  %v1031_v55 = vmax.f32 %v914_v50, 0.0 }
  0xe8   : > { %1103 = vst [vmem:[%s1659_s30 + $0x1d8] sm:$0xff] %v1005_v51  ;;  %v980_v56 = vmax.f32 %v787_v52, 0.0 }
  0xe9   : > { %v956_v57 = vmax.f32 %v727_v54, 0.0  ;;  %1129 = vst [vmem:[%s1659_s30 + $0x2a8] sm:$0xff] %v1031_v55 }
  0xea   : > { %1078 = vst [vmem:[%s1659_s30 + $0x110] sm:$0xff] %v980_v56 }
  0xeb   : > { %v851_v58 = vpop.f32.mrf.mxu2  ;;  %1054 = vst [vmem:[%s1659_s30 + $0x50] sm:$0xff] %v956_v57 }
  0xec   : > { %v852_v59 = vadd.f32 %v1648_v40, %v851_v58  ;;  %v916_v60 = vpop.f32.mrf.mxu3 }
  0xed   : > { %v788_v61 = vpop.f32.mrf.mxu1  ;;  %v917_v62 = vadd.f32 %v1648_v40, %v916_v60 }
  0xee   : > { %v1006_v63 = vmax.f32 %v852_v59, 0.0  ;;  %v789_v0 = vadd.f32 %v1648_v40, %v788_v61  ;;  %v728_v1 = vpop.f32.mrf.mxu0 }
  0xef   : > { %v729_v2 = vadd.f32 %v1648_v40, %v728_v1  ;;  %v1032_v3 = vmax.f32 %v917_v62, 0.0 }
  0xf0   : > { %1104 = vst [vmem:[%s1659_s30 + $0x1e0] sm:$0xff] %v1006_v63  ;;  %v981_v4 = vmax.f32 %v789_v0, 0.0 }
  0xf1   : > { %v957_v5 = vmax.f32 %v729_v2, 0.0  ;;  %1130 = vst [vmem:[%s1659_s30 + $0x2b0] sm:$0xff] %v1032_v3 }
  0xf2   : > { %1079 = vst [vmem:[%s1659_s30 + $0x118] sm:$0xff] %v981_v4 }
  0xf3   : > { %v853_v6 = vpop.f32.mrf.mxu2  ;;  %1055 = vst [vmem:[%s1659_s30 + $0x58] sm:$0xff] %v957_v5 }
  0xf4   : > { %v854_v7 = vadd.f32 %v1648_v40, %v853_v6  ;;  %v918_v8 = vpop.f32.mrf.mxu3 }
  0xf5   : > { %v791_v9 = vpop.f32.mrf.mxu1  ;;  %v919_v10 = vadd.f32 %v1648_v40, %v918_v8 }
  0xf6   : > { %v1007_v11 = vmax.f32 %v854_v7, 0.0  ;;  %v792_v12 = vadd.f32 %v1648_v40, %v791_v9  ;;  %v731_v13 = vpop.f32.mrf.mxu0 }
  0xf7   : > { %v732_v14 = vadd.f32 %v1648_v40, %v731_v13  ;;  %v1033_v15 = vmax.f32 %v919_v10, 0.0 }
  0xf8   : > { %1105 = vst [vmem:[%s1659_s30 + $0x1e8] sm:$0xff] %v1007_v11  ;;  %v982_v16 = vmax.f32 %v792_v12, 0.0 }
  0xf9   : > { %v958_v17 = vmax.f32 %v732_v14, 0.0  ;;  %1131 = vst [vmem:[%s1659_s30 + $0x2b8] sm:$0xff] %v1033_v15 }
  0xfa   : > { %1080 = vst [vmem:[%s1659_s30 + $0x120] sm:$0xff] %v982_v16 }
  0xfb   : > { %v856_v18 = vpop.f32.mrf.mxu2  ;;  %1056 = vst [vmem:[%s1659_s30 + $0x60] sm:$0xff] %v958_v17 }
  0xfc   : > { %v857_v19 = vadd.f32 %v1648_v40, %v856_v18  ;;  %v921_v20 = vpop.f32.mrf.mxu3 }
  0xfd   : > { %v793_v21 = vpop.f32.mrf.mxu1  ;;  %v922_v22 = vadd.f32 %v1648_v40, %v921_v20 }
  0xfe   : > { %v1008_v23 = vmax.f32 %v857_v19, 0.0  ;;  %v794_v24 = vadd.f32 %v1648_v40, %v793_v21  ;;  %v733_v25 = vpop.f32.mrf.mxu0 }
  0xff   : > { %v734_v26 = vadd.f32 %v1648_v40, %v733_v25  ;;  %v1034_v27 = vmax.f32 %v922_v22, 0.0 }
 0x100   : > { %1106 = vst [vmem:[%s1659_s30 + $0x1f0] sm:$0xff] %v1008_v23  ;;  %v983_v28 = vmax.f32 %v794_v24, 0.0 }
 0x101   : > { %v959_v29 = vmax.f32 %v734_v26, 0.0  ;;  %1132 = vst [vmem:[%s1659_s30 + $0x2c0] sm:$0xff] %v1034_v27 }
 0x102   : > { %1081 = vst [vmem:[%s1659_s30 + $0x128] sm:$0xff] %v983_v28 }
 0x103   : > { %v858_v30 = vpop.f32.mrf.mxu2  ;;  %1057 = vst [vmem:[%s1659_s30 + $0x68] sm:$0xff] %v959_v29 }
 0x104   : > { %v859_v31 = vadd.f32 %v1648_v40, %v858_v30  ;;  %v923_v32 = vpop.f32.mrf.mxu3 }
 0x105   : > { %v796_v33 = vpop.f32.mrf.mxu1  ;;  %v924_v34 = vadd.f32 %v1648_v40, %v923_v32 }
 0x106   : > { %v1009_v35 = vmax.f32 %v859_v31, 0.0  ;;  %v797_v36 = vadd.f32 %v1648_v40, %v796_v33  ;;  %v736_v37 = vpop.f32.mrf.mxu0 }
 0x107   : > { %v737_v38 = vadd.f32 %v1648_v40, %v736_v37  ;;  %v1035_v39 = vmax.f32 %v924_v34, 0.0 }
 0x108   : > { %1107 = vst [vmem:[%s1659_s30 + $0x1f8] sm:$0xff] %v1009_v35  ;;  %v984_v41 = vmax.f32 %v797_v36, 0.0 }
 0x109   : > { %v960_v42 = vmax.f32 %v737_v38, 0.0  ;;  %1133 = vst [vmem:[%s1659_s30 + $0x2c8] sm:$0xff] %v1035_v39 }
 0x10a   : > { %1082 = vst [vmem:[%s1659_s30 + $0x130] sm:$0xff] %v984_v41 }
 0x10b   : > { %v861_v43 = vpop.f32.mrf.mxu2  ;;  %1058 = vst [vmem:[%s1659_s30 + $0x70] sm:$0xff] %v960_v42 }
 0x10c   : > { %v862_v44 = vadd.f32 %v1648_v40, %v861_v43  ;;  %v926_v45 = vpop.f32.mrf.mxu3 }
 0x10d   : > { %v798_v46 = vpop.f32.mrf.mxu1  ;;  %v927_v47 = vadd.f32 %v1648_v40, %v926_v45 }
 0x10e   : > { %v1010_v48 = vmax.f32 %v862_v44, 0.0  ;;  %v799_v49 = vadd.f32 %v1648_v40, %v798_v46  ;;  %v738_v50 = vpop.f32.mrf.mxu0 }
 0x10f   : > { %v739_v51 = vadd.f32 %v1648_v40, %v738_v50  ;;  %v1036_v52 = vmax.f32 %v927_v47, 0.0 }
 0x110   : > { %1108 = vst [vmem:[%s1659_s30 + $0x200] sm:$0xff] %v1010_v48  ;;  %v985_v53 = vmax.f32 %v799_v49, 0.0 }
 0x111   : > { %v961_v54 = vmax.f32 %v739_v51, 0.0  ;;  %1134 = vst [vmem:[%s1659_s30 + $0x2d0] sm:$0xff] %v1036_v52 }
 0x112   : > { %1083 = vst [vmem:[%s1659_s30 + $0x138] sm:$0xff] %v985_v53 }
 0x113   : > { %v863_v55 = vpop.f32.mrf.mxu2  ;;  %1059 = vst [vmem:[%s1659_s30 + $0x78] sm:$0xff] %v961_v54 }
 0x114   : > { %v864_v56 = vadd.f32 %v1648_v40, %v863_v55  ;;  %v928_v57 = vpop.f32.mrf.mxu3 }
 0x115   : > { %v801_v58 = vpop.f32.mrf.mxu1  ;;  %v929_v59 = vadd.f32 %v1648_v40, %v928_v57 }
 0x116   : > { %v1011_v60 = vmax.f32 %v864_v56, 0.0  ;;  %v802_v61 = vadd.f32 %v1648_v40, %v801_v58  ;;  %v741_v62 = vpop.f32.mrf.mxu0 }
 0x117   : > { %v742_v63 = vadd.f32 %v1648_v40, %v741_v62  ;;  %v1037_v0 = vmax.f32 %v929_v59, 0.0 }
 0x118   : > { %1109 = vst [vmem:[%s1659_s30 + $0x208] sm:$0xff] %v1011_v60  ;;  %v986_v1 = vmax.f32 %v802_v61, 0.0 }
 0x119   : > { %v962_v2 = vmax.f32 %v742_v63, 0.0  ;;  %1135 = vst [vmem:[%s1659_s30 + $0x2d8] sm:$0xff] %v1037_v0 }
 0x11a   : > { %1084 = vst [vmem:[%s1659_s30 + $0x140] sm:$0xff] %v986_v1 }
 0x11b   : > { %v866_v3 = vpop.f32.mrf.mxu2  ;;  %1060 = vst [vmem:[%s1659_s30 + $0x80] sm:$0xff] %v962_v2 }
 0x11c   : > { %v867_v4 = vadd.f32 %v1648_v40, %v866_v3  ;;  %v931_v5 = vpop.f32.mrf.mxu3 }
 0x11d   : > { %v803_v6 = vpop.f32.mrf.mxu1  ;;  %v932_v7 = vadd.f32 %v1648_v40, %v931_v5 }
 0x11e   : > { %v1012_v8 = vmax.f32 %v867_v4, 0.0  ;;  %v804_v9 = vadd.f32 %v1648_v40, %v803_v6  ;;  %v743_v10 = vpop.f32.mrf.mxu0 }
 0x11f   : > { %v744_v11 = vadd.f32 %v1648_v40, %v743_v10  ;;  %v1038_v12 = vmax.f32 %v932_v7, 0.0 }
 0x120   : > { %1110 = vst [vmem:[%s1659_s30 + $0x210] sm:$0xff] %v1012_v8  ;;  %v987_v13 = vmax.f32 %v804_v9, 0.0 }
 0x121   : > { %v963_v14 = vmax.f32 %v744_v11, 0.0  ;;  %1136 = vst [vmem:[%s1659_s30 + $0x2e0] sm:$0xff] %v1038_v12 }
 0x122   : > { %1085 = vst [vmem:[%s1659_s30 + $0x148] sm:$0xff] %v987_v13 }
 0x123   : > { %v868_v15 = vpop.f32.mrf.mxu2  ;;  %1061 = vst [vmem:[%s1659_s30 + $0x88] sm:$0xff] %v963_v14 }
 0x124   : > { %v869_v16 = vadd.f32 %v1648_v40, %v868_v15  ;;  %v933_v17 = vpop.f32.mrf.mxu3 }
 0x125   : > { %v806_v18 = vpop.f32.mrf.mxu1  ;;  %v934_v19 = vadd.f32 %v1648_v40, %v933_v17 }
 0x126   : > { %v1013_v20 = vmax.f32 %v869_v16, 0.0  ;;  %v807_v21 = vadd.f32 %v1648_v40, %v806_v18  ;;  %v746_v22 = vpop.f32.mrf.mxu0 }
 0x127   : > { %v747_v23 = vadd.f32 %v1648_v40, %v746_v22  ;;  %v1039_v24 = vmax.f32 %v934_v19, 0.0 }
 0x128   : > { %1111 = vst [vmem:[%s1659_s30 + $0x218] sm:$0xff] %v1013_v20  ;;  %v988_v25 = vmax.f32 %v807_v21, 0.0 }
 0x129   : > { %v964_v26 = vmax.f32 %v747_v23, 0.0  ;;  %1137 = vst [vmem:[%s1659_s30 + $0x2e8] sm:$0xff] %v1039_v24 }
 0x12a   : > { %1086 = vst [vmem:[%s1659_s30 + $0x150] sm:$0xff] %v988_v25 }
 0x12b   : > { %v871_v27 = vpop.f32.mrf.mxu2  ;;  %1062 = vst [vmem:[%s1659_s30 + $0x90] sm:$0xff] %v964_v26 }
 0x12c   : > { %v872_v28 = vadd.f32 %v1648_v40, %v871_v27  ;;  %v936_v29 = vpop.f32.mrf.mxu3 }
 0x12d   : > { %v808_v30 = vpop.f32.mrf.mxu1  ;;  %v937_v31 = vadd.f32 %v1648_v40, %v936_v29 }
 0x12e   : > { %v1014_v32 = vmax.f32 %v872_v28, 0.0  ;;  %v809_v33 = vadd.f32 %v1648_v40, %v808_v30  ;;  %v748_v34 = vpop.f32.mrf.mxu0 }
 0x12f   : > { %v749_v35 = vadd.f32 %v1648_v40, %v748_v34  ;;  %v1040_v36 = vmax.f32 %v937_v31, 0.0 }
 0x130   : > { %1112 = vst [vmem:[%s1659_s30 + $0x220] sm:$0xff] %v1014_v32  ;;  %v989_v37 = vmax.f32 %v809_v33, 0.0 }
 0x131   : > { %v965_v38 = vmax.f32 %v749_v35, 0.0  ;;  %1138 = vst [vmem:[%s1659_s30 + $0x2f0] sm:$0xff] %v1040_v36 }
 0x132   : > { %1087 = vst [vmem:[%s1659_s30 + $0x158] sm:$0xff] %v989_v37 }
 0x133   : > { %v873_v39 = vpop.f32.mrf.mxu2  ;;  %1063 = vst [vmem:[%s1659_s30 + $0x98] sm:$0xff] %v965_v38 }
 0x134   : > { %v874_v41 = vadd.f32 %v1648_v40, %v873_v39  ;;  %v938_v42 = vpop.f32.mrf.mxu3 }
 0x135   : > { %v811_v43 = vpop.f32.mrf.mxu1  ;;  %v939_v44 = vadd.f32 %v1648_v40, %v938_v42 }
 0x136   : > { %v1015_v45 = vmax.f32 %v874_v41, 0.0  ;;  %v812_v46 = vadd.f32 %v1648_v40, %v811_v43  ;;  %v751_v47 = vpop.f32.mrf.mxu0 }
 0x137   : > { %v752_v48 = vadd.f32 %v1648_v40, %v751_v47  ;;  %v1041_v49 = vmax.f32 %v939_v44, 0.0 }
 0x138   : > { %1113 = vst [vmem:[%s1659_s30 + $0x228] sm:$0xff] %v1015_v45  ;;  %v990_v50 = vmax.f32 %v812_v46, 0.0 }
 0x139   : > { %v966_v51 = vmax.f32 %v752_v48, 0.0  ;;  %1139 = vst [vmem:[%s1659_s30 + $0x2f8] sm:$0xff] %v1041_v49 }
 0x13a   : > { %1088 = vst [vmem:[%s1659_s30 + $0x160] sm:$0xff] %v990_v50 }
 0x13b   : > { %v876_v52 = vpop.f32.mrf.mxu2  ;;  %1064 = vst [vmem:[%s1659_s30 + $0xa0] sm:$0xff] %v966_v51 }
 0x13c   : > { %v877_v53 = vadd.f32 %v1648_v40, %v876_v52  ;;  %v941_v54 = vpop.f32.mrf.mxu3 }
 0x13d   : > { %v813_v55 = vpop.f32.mrf.mxu1  ;;  %v942_v56 = vadd.f32 %v1648_v40, %v941_v54 }
 0x13e   : > { %v1016_v57 = vmax.f32 %v877_v53, 0.0  ;;  %v814_v58 = vadd.f32 %v1648_v40, %v813_v55  ;;  %v753_v59 = vpop.f32.mrf.mxu0 }
 0x13f   : > { %v754_v60 = vadd.f32 %v1648_v40, %v753_v59  ;;  %v1042_v61 = vmax.f32 %v942_v56, 0.0 }
 0x140   : > { %1114 = vst [vmem:[%s1659_s30 + $0x230] sm:$0xff] %v1016_v57  ;;  %v991_v62 = vmax.f32 %v814_v58, 0.0 }
 0x141   : > { %v967_v63 = vmax.f32 %v754_v60, 0.0  ;;  %1140 = vst [vmem:[%s1659_s30 + $0x300] sm:$0xff] %v1042_v61 }
 0x142   : > { %1089 = vst [vmem:[%s1659_s30 + $0x168] sm:$0xff] %v991_v62 }
 0x143   : > { %v878_v0 = vpop.f32.mrf.mxu2  ;;  %1065 = vst [vmem:[%s1659_s30 + $0xa8] sm:$0xff] %v967_v63 }
 0x144   : > { %v879_v1 = vadd.f32 %v1648_v40, %v878_v0  ;;  %v943_v2 = vpop.f32.mrf.mxu3 }
 0x145   : > { %v816_v3 = vpop.f32.mrf.mxu1  ;;  %v944_v4 = vadd.f32 %v1648_v40, %v943_v2 }
 0x146   : > { %v1017_v5 = vmax.f32 %v879_v1, 0.0  ;;  %v817_v6 = vadd.f32 %v1648_v40, %v816_v3  ;;  %v756_v7 = vpop.f32.mrf.mxu0 }
 0x147   : > { %v757_v8 = vadd.f32 %v1648_v40, %v756_v7  ;;  %v1043_v9 = vmax.f32 %v944_v4, 0.0 }
 0x148   : > { %1115 = vst [vmem:[%s1659_s30 + $0x238] sm:$0xff] %v1017_v5  ;;  %v992_v10 = vmax.f32 %v817_v6, 0.0 }
 0x149   : > { %v968_v11 = vmax.f32 %v757_v8, 0.0  ;;  %1141 = vst [vmem:[%s1659_s30 + $0x308] sm:$0xff] %v1043_v9 }
 0x14a   : > { %1090 = vst [vmem:[%s1659_s30 + $0x170] sm:$0xff] %v992_v10 }
 0x14b   : > { %v881_v12 = vpop.f32.mrf.mxu2  ;;  %1066 = vst [vmem:[%s1659_s30 + $0xb0] sm:$0xff] %v968_v11 }
 0x14c   : > { %v882_v13 = vadd.f32 %v1648_v40, %v881_v12 }
 0x14d   : > { %v818_v14 = vpop.f32.mrf.mxu1 }
 0x14e   : > { %v1018_v15 = vmax.f32 %v882_v13, 0.0  ;;  %v819_v16 = vadd.f32 %v1648_v40, %v818_v14  ;;  %v758_v17 = vpop.f32.mrf.mxu0 }
 0x14f   : > { %v759_v18 = vadd.f32 %v1648_v40, %v758_v17 }
 0x150   : > { %1116 = vst [vmem:[%s1659_s30 + $0x240] sm:$0xff] %v1018_v15  ;;  %v993_v19 = vmax.f32 %v819_v16, 0.0 }
 0x151   : > { %v969_v20 = vmax.f32 %v759_v18, 0.0 }
 0x152   : > { %1091 = vst [vmem:[%s1659_s30 + $0x178] sm:$0xff] %v993_v19 }
 0x153   : > { %v883_v21 = vpop.f32.mrf.mxu2  ;;  %1067 = vst [vmem:[%s1659_s30 + $0xb8] sm:$0xff] %v969_v20 }
 0x154   : > { %v884_v22 = vadd.f32 %v1648_v40, %v883_v21 }
 0x155   : > { %v821_v23 = vpop.f32.mrf.mxu1 }
 0x156   : > { %v1019_v24 = vmax.f32 %v884_v22, 0.0  ;;  %v822_v25 = vadd.f32 %v1648_v40, %v821_v23 }
 0x158   : > { %1117 = vst [vmem:[%s1659_s30 + $0x248] sm:$0xff] %v1019_v24  ;;  %v994_v26 = vmax.f32 %v822_v25, 0.0 }
 0x15a   : > { %1092 = vst [vmem:[%s1659_s30 + $0x180] sm:$0xff] %v994_v26 }
 0x15b   : > { %v886_v27 = vpop.f32.mrf.mxu2 }
 0x15c   : > { %v887_v28 = vadd.f32 %v1648_v40, %v886_v27 }
 0x15d   : > { %v823_v29 = vpop.f32.mrf.mxu1 }
 0x15e   : > { %v1020_v30 = vmax.f32 %v887_v28, 0.0  ;;  %v824_v31 = vadd.f32 %v1648_v40, %v823_v29 }
 0x160   : > { %1118 = vst [vmem:[%s1659_s30 + $0x250] sm:$0xff] %v1020_v30  ;;  %v995_v32 = vmax.f32 %v824_v31, 0.0 }
 0x162   : > { %1093 = vst [vmem:[%s1659_s30 + $0x188] sm:$0xff] %v995_v32 }
 0x163   : > { %v888_v33 = vpop.f32.mrf.mxu2 }
 0x164   : > { %v889_v34 = vadd.f32 %v1648_v40, %v888_v33 }
 0x166   : > { %v1021_v35 = vmax.f32 %v889_v34, 0.0 }
 0x168   : > { %1119 = vst [vmem:[%s1659_s30 + $0x258] sm:$0xff] %v1021_v35 }
 0x169 PF: > { %s13_s12 = sadd.s32 1, %s1533_s12  }
 0x16a   : > { %p10_p4 = scmp.ge.s32.totalorder %s13_s12, 4  }
 0x16c   :  { %12 = sbr.rel (!%p10_p4) target bundleno = 1 (0x1), region = 62 }

// kernel: _lambda_.6
= control target key start
LH: loop header
LB: loop body
LE: loop exit
PB: predicated region body
PF: predicated region fallthrough
CT: control target
= control target key end

     0   :  { %s1173_s0 = inlined_call_operand.vmem [shape: f32[392,128], index: 0, kind: input, shape index: {}]   ;;  %s1174_s1 = inlined_call_operand.vmem [shape: f32[392,128], index: 1, kind: input, shape index: {}]   ;;  %s1175_s2 = inlined_call_operand.vmem [shape: f32[392,128], index: 2, kind: input, shape index: {}]   ;;  %s1176_s3 = inlined_call_operand.vmem [shape: f32[392,128], index: 3, kind: input, shape index: {}]   ;;  %s1177_s4 = inlined_call_operand.vmem [shape: f32[392,128], index: 4, kind: output, shape index: {}]  }
   0x1   :  { %v17_v0 = vld [vmem:[%s1173_s0] sm:$0xff]  ;;  %v18_v5 = vld [vmem:[%s1173_s0 + $0x8] sm:$0xff]  ;;  %v19_v11 = vld [vmem:[%s1173_s0 + $0x10] sm:$0xff] }
   0x2   :  { %v66_v1 = vld [vmem:[%s1174_s1] sm:$0xff]  ;;  %v67_v6 = vld [vmem:[%s1174_s1 + $0x8] sm:$0xff]  ;;  %v68_v13 = vld [vmem:[%s1174_s1 + $0x10] sm:$0xff] }
   0x3   :  { %v164_v2 = vld [vmem:[%s1175_s2] sm:$0xff]  ;;  %v115_v3 = vmax.f32 %v17_v0, %v66_v1  ;;  %v116_v8 = vmax.f32 %v18_v5, %v67_v6  ;;  %v165_v9 = vld [vmem:[%s1175_s2 + $0x8] sm:$0xff]  ;;  %v166_v14 = vld [vmem:[%s1175_s2 + $0x10] sm:$0xff]  ;;  %v117_v17 = vmax.f32 %v19_v11, %v68_v13 }
   0x4   :  { %v213_v4 = vld [vmem:[%s1176_s3] sm:$0xff]  ;;  %v214_v10 = vld [vmem:[%s1176_s3 + $0x8] sm:$0xff]  ;;  %v215_v15 = vld [vmem:[%s1176_s3 + $0x10] sm:$0xff] }
   0x5   :  { %v262_v7 = vmax.f32 %v164_v2, %v213_v4  ;;  %v263_v12 = vmax.f32 %v165_v9, %v214_v10  ;;  %v264_v18 = vmax.f32 %v166_v14, %v215_v15  ;;  %v20_v19 = vld [vmem:[%s1173_s0 + $0x18] sm:$0xff]  ;;  %v21_v25 = vld [vmem:[%s1173_s0 + $0x20] sm:$0xff]  ;;  %v22_v32 = vld [vmem:[%s1173_s0 + $0x28] sm:$0xff] }
   0x6   :  { %v69_v20 = vld [vmem:[%s1174_s1 + $0x18] sm:$0xff]  ;;  %v70_v26 = vld [vmem:[%s1174_s1 + $0x20] sm:$0xff]  ;;  %v71_v34 = vld [vmem:[%s1174_s1 + $0x28] sm:$0xff] }
   0x7   :  { %v311_v16 = vmax.f32 %v115_v3, %v262_v7  ;;  %v167_v21 = vld [vmem:[%s1175_s2 + $0x18] sm:$0xff]  ;;  %v312_v22 = vmax.f32 %v116_v8, %v263_v12  ;;  %v118_v23 = vmax.f32 %v20_v19, %v69_v20  ;;  %v313_v27 = vmax.f32 %v117_v17, %v264_v18  ;;  %v168_v30 = vld [vmem:[%s1175_s2 + $0x20] sm:$0xff]  ;;  %v169_v35 = vld [vmem:[%s1175_s2 + $0x28] sm:$0xff] }
   0x8   :  { %v216_v24 = vld [vmem:[%s1176_s3 + $0x18] sm:$0xff]  ;;  %v119_v29 = vmax.f32 %v21_v25, %v70_v26  ;;  %v217_v31 = vld [vmem:[%s1176_s3 + $0x20] sm:$0xff]  ;;  %v218_v36 = vld [vmem:[%s1176_s3 + $0x28] sm:$0xff]  ;;  %v120_v38 = vmax.f32 %v22_v32, %v71_v34 }
   0x9   :  { %360 = vst [vmem:[%s1177_s4] sm:$0xff] %v311_v16  ;;  %v265_v28 = vmax.f32 %v167_v21, %v216_v24  ;;  %v266_v33 = vmax.f32 %v168_v30, %v217_v31  ;;  %v267_v39 = vmax.f32 %v169_v35, %v218_v36  ;;  %v23_v40 = vld [vmem:[%s1173_s0 + $0x30] sm:$0xff]  ;;  %v24_v46 = vld [vmem:[%s1173_s0 + $0x38] sm:$0xff]  ;;  %v25_v53 = vld [vmem:[%s1173_s0 + $0x40] sm:$0xff] }
   0xa   :  { %361 = vst [vmem:[%s1177_s4 + $0x8] sm:$0xff] %v312_v22  ;;  %v72_v41 = vld [vmem:[%s1174_s1 + $0x30] sm:$0xff]  ;;  %v73_v47 = vld [vmem:[%s1174_s1 + $0x38] sm:$0xff]  ;;  %v74_v55 = vld [vmem:[%s1174_s1 + $0x40] sm:$0xff] }
   0xb   :  { %362 = vst [vmem:[%s1177_s4 + $0x10] sm:$0xff] %v313_v27  ;;  %v314_v37 = vmax.f32 %v118_v23, %v265_v28  ;;  %v170_v42 = vld [vmem:[%s1175_s2 + $0x30] sm:$0xff]  ;;  %v315_v43 = vmax.f32 %v119_v29, %v266_v33  ;;  %v121_v44 = vmax.f32 %v23_v40, %v72_v41  ;;  %v316_v48 = vmax.f32 %v120_v38, %v267_v39  ;;  %v171_v51 = vld [vmem:[%s1175_s2 + $0x38] sm:$0xff]  ;;  %v172_v56 = vld [vmem:[%s1175_s2 + $0x40] sm:$0xff] }
   0xc   :  { %v219_v45 = vld [vmem:[%s1176_s3 + $0x30] sm:$0xff]  ;;  %v122_v50 = vmax.f32 %v24_v46, %v73_v47  ;;  %v220_v52 = vld [vmem:[%s1176_s3 + $0x38] sm:$0xff]  ;;  %v221_v57 = vld [vmem:[%s1176_s3 + $0x40] sm:$0xff]  ;;  %v123_v59 = vmax.f32 %v25_v53, %v74_v55 }
   0xd   :  { %363 = vst [vmem:[%s1177_s4 + $0x18] sm:$0xff] %v314_v37  ;;  %v268_v49 = vmax.f32 %v170_v42, %v219_v45  ;;  %v269_v54 = vmax.f32 %v171_v51, %v220_v52  ;;  %v270_v60 = vmax.f32 %v172_v56, %v221_v57  ;;  %v26_v61 = vld [vmem:[%s1173_s0 + $0x48] sm:$0xff]  ;;  %v27_v3 = vld [vmem:[%s1173_s0 + $0x50] sm:$0xff]  ;;  %v28_v10 = vld [vmem:[%s1173_s0 + $0x58] sm:$0xff] }
   0xe   :  { %364 = vst [vmem:[%s1177_s4 + $0x20] sm:$0xff] %v315_v43  ;;  %v75_v62 = vld [vmem:[%s1174_s1 + $0x48] sm:$0xff]  ;;  %v76_v4 = vld [vmem:[%s1174_s1 + $0x50] sm:$0xff]  ;;  %v77_v12 = vld [vmem:[%s1174_s1 + $0x58] sm:$0xff] }
   0xf   :  { %365 = vst [vmem:[%s1177_s4 + $0x28] sm:$0xff] %v316_v48  ;;  %v317_v58 = vmax.f32 %v121_v44, %v268_v49  ;;  %v173_v63 = vld [vmem:[%s1175_s2 + $0x48] sm:$0xff]  ;;  %v318_v0 = vmax.f32 %v122_v50, %v269_v54  ;;  %v124_v1 = vmax.f32 %v26_v61, %v75_v62  ;;  %v319_v5 = vmax.f32 %v123_v59, %v270_v60  ;;  %v174_v8 = vld [vmem:[%s1175_s2 + $0x50] sm:$0xff]  ;;  %v175_v13 = vld [vmem:[%s1175_s2 + $0x58] sm:$0xff] }
  0x10   :  { %v222_v2 = vld [vmem:[%s1176_s3 + $0x48] sm:$0xff]  ;;  %v125_v7 = vmax.f32 %v27_v3, %v76_v4  ;;  %v223_v9 = vld [vmem:[%s1176_s3 + $0x50] sm:$0xff]  ;;  %v224_v14 = vld [vmem:[%s1176_s3 + $0x58] sm:$0xff]  ;;  %v126_v16 = vmax.f32 %v28_v10, %v77_v12 }
  0x11   :  { %366 = vst [vmem:[%s1177_s4 + $0x30] sm:$0xff] %v317_v58  ;;  %v271_v6 = vmax.f32 %v173_v63, %v222_v2  ;;  %v272_v11 = vmax.f32 %v174_v8, %v223_v9  ;;  %v273_v17 = vmax.f32 %v175_v13, %v224_v14  ;;  %v29_v18 = vld [vmem:[%s1173_s0 + $0x60] sm:$0xff]  ;;  %v30_v24 = vld [vmem:[%s1173_s0 + $0x68] sm:$0xff]  ;;  %v31_v31 = vld [vmem:[%s1173_s0 + $0x70] sm:$0xff] }
  0x12   :  { %367 = vst [vmem:[%s1177_s4 + $0x38] sm:$0xff] %v318_v0  ;;  %v78_v19 = vld [vmem:[%s1174_s1 + $0x60] sm:$0xff]  ;;  %v79_v25 = vld [vmem:[%s1174_s1 + $0x68] sm:$0xff]  ;;  %v80_v33 = vld [vmem:[%s1174_s1 + $0x70] sm:$0xff] }
  0x13   :  { %368 = vst [vmem:[%s1177_s4 + $0x40] sm:$0xff] %v319_v5  ;;  %v320_v15 = vmax.f32 %v124_v1, %v271_v6  ;;  %v176_v20 = vld [vmem:[%s1175_s2 + $0x60] sm:$0xff]  ;;  %v321_v21 = vmax.f32 %v125_v7, %v272_v11  ;;  %v127_v22 = vmax.f32 %v29_v18, %v78_v19  ;;  %v322_v26 = vmax.f32 %v126_v16, %v273_v17  ;;  %v177_v29 = vld [vmem:[%s1175_s2 + $0x68] sm:$0xff]  ;;  %v178_v34 = vld [vmem:[%s1175_s2 + $0x70] sm:$0xff] }
  0x14   :  { %v225_v23 = vld [vmem:[%s1176_s3 + $0x60] sm:$0xff]  ;;  %v128_v28 = vmax.f32 %v30_v24, %v79_v25  ;;  %v226_v30 = vld [vmem:[%s1176_s3 + $0x68] sm:$0xff]  ;;  %v227_v35 = vld [vmem:[%s1176_s3 + $0x70] sm:$0xff]  ;;  %v129_v37 = vmax.f32 %v31_v31, %v80_v33 }
  0x15   :  { %369 = vst [vmem:[%s1177_s4 + $0x48] sm:$0xff] %v320_v15  ;;  %v274_v27 = vmax.f32 %v176_v20, %v225_v23  ;;  %v275_v32 = vmax.f32 %v177_v29, %v226_v30  ;;  %v276_v38 = vmax.f32 %v178_v34, %v227_v35  ;;  %v32_v39 = vld [vmem:[%s1173_s0 + $0x78] sm:$0xff]  ;;  %v33_v45 = vld [vmem:[%s1173_s0 + $0x80] sm:$0xff]  ;;  %v34_v52 = vld [vmem:[%s1173_s0 + $0x88] sm:$0xff] }
  0x16   :  { %370 = vst [vmem:[%s1177_s4 + $0x50] sm:$0xff] %v321_v21  ;;  %v81_v40 = vld [vmem:[%s1174_s1 + $0x78] sm:$0xff]  ;;  %v82_v46 = vld [vmem:[%s1174_s1 + $0x80] sm:$0xff]  ;;  %v83_v54 = vld [vmem:[%s1174_s1 + $0x88] sm:$0xff] }
  0x17   :  { %371 = vst [vmem:[%s1177_s4 + $0x58] sm:$0xff] %v322_v26  ;;  %v323_v36 = vmax.f32 %v127_v22, %v274_v27  ;;  %v179_v41 = vld [vmem:[%s1175_s2 + $0x78] sm:$0xff]  ;;  %v324_v42 = vmax.f32 %v128_v28, %v275_v32  ;;  %v130_v43 = vmax.f32 %v32_v39, %v81_v40  ;;  %v325_v47 = vmax.f32 %v129_v37, %v276_v38  ;;  %v180_v50 = vld [vmem:[%s1175_s2 + $0x80] sm:$0xff]  ;;  %v181_v55 = vld [vmem:[%s1175_s2 + $0x88] sm:$0xff] }
  0x18   :  { %v228_v44 = vld [vmem:[%s1176_s3 + $0x78] sm:$0xff]  ;;  %v131_v49 = vmax.f32 %v33_v45, %v82_v46  ;;  %v229_v51 = vld [vmem:[%s1176_s3 + $0x80] sm:$0xff]  ;;  %v230_v56 = vld [vmem:[%s1176_s3 + $0x88] sm:$0xff]  ;;  %v132_v58 = vmax.f32 %v34_v52, %v83_v54 }
  0x19   :  { %372 = vst [vmem:[%s1177_s4 + $0x60] sm:$0xff] %v323_v36  ;;  %v277_v48 = vmax.f32 %v179_v41, %v228_v44  ;;  %v278_v53 = vmax.f32 %v180_v50, %v229_v51  ;;  %v279_v59 = vmax.f32 %v181_v55, %v230_v56  ;;  %v35_v60 = vld [vmem:[%s1173_s0 + $0x90] sm:$0xff]  ;;  %v36_v2 = vld [vmem:[%s1173_s0 + $0x98] sm:$0xff]  ;;  %v37_v9 = vld [vmem:[%s1173_s0 + $0xa0] sm:$0xff] }
  0x1a   :  { %373 = vst [vmem:[%s1177_s4 + $0x68] sm:$0xff] %v324_v42  ;;  %v84_v61 = vld [vmem:[%s1174_s1 + $0x90] sm:$0xff]  ;;  %v85_v3 = vld [vmem:[%s1174_s1 + $0x98] sm:$0xff]  ;;  %v86_v11 = vld [vmem:[%s1174_s1 + $0xa0] sm:$0xff] }
  0x1b   :  { %374 = vst [vmem:[%s1177_s4 + $0x70] sm:$0xff] %v325_v47  ;;  %v326_v57 = vmax.f32 %v130_v43, %v277_v48  ;;  %v182_v62 = vld [vmem:[%s1175_s2 + $0x90] sm:$0xff]  ;;  %v327_v63 = vmax.f32 %v131_v49, %v278_v53  ;;  %v133_v0 = vmax.f32 %v35_v60, %v84_v61  ;;  %v328_v4 = vmax.f32 %v132_v58, %v279_v59  ;;  %v183_v7 = vld [vmem:[%s1175_s2 + $0x98] sm:$0xff]  ;;  %v184_v12 = vld [vmem:[%s1175_s2 + $0xa0] sm:$0xff] }
  0x1c   :  { %v231_v1 = vld [vmem:[%s1176_s3 + $0x90] sm:$0xff]  ;;  %v134_v6 = vmax.f32 %v36_v2, %v85_v3  ;;  %v232_v8 = vld [vmem:[%s1176_s3 + $0x98] sm:$0xff]  ;;  %v233_v13 = vld [vmem:[%s1176_s3 + $0xa0] sm:$0xff]  ;;  %v135_v15 = vmax.f32 %v37_v9, %v86_v11 }
  0x1d   :  { %375 = vst [vmem:[%s1177_s4 + $0x78] sm:$0xff] %v326_v57  ;;  %v280_v5 = vmax.f32 %v182_v62, %v231_v1  ;;  %v281_v10 = vmax.f32 %v183_v7, %v232_v8  ;;  %v282_v16 = vmax.f32 %v184_v12, %v233_v13  ;;  %v38_v17 = vld [vmem:[%s1173_s0 + $0xa8] sm:$0xff]  ;;  %v39_v23 = vld [vmem:[%s1173_s0 + $0xb0] sm:$0xff]  ;;  %v40_v30 = vld [vmem:[%s1173_s0 + $0xb8] sm:$0xff] }
  0x1e   :  { %376 = vst [vmem:[%s1177_s4 + $0x80] sm:$0xff] %v327_v63  ;;  %v87_v18 = vld [vmem:[%s1174_s1 + $0xa8] sm:$0xff]  ;;  %v88_v24 = vld [vmem:[%s1174_s1 + $0xb0] sm:$0xff]  ;;  %v89_v32 = vld [vmem:[%s1174_s1 + $0xb8] sm:$0xff] }
  0x1f   :  { %377 = vst [vmem:[%s1177_s4 + $0x88] sm:$0xff] %v328_v4  ;;  %v329_v14 = vmax.f32 %v133_v0, %v280_v5  ;;  %v185_v19 = vld [vmem:[%s1175_s2 + $0xa8] sm:$0xff]  ;;  %v330_v20 = vmax.f32 %v134_v6, %v281_v10  ;;  %v136_v21 = vmax.f32 %v38_v17, %v87_v18  ;;  %v331_v25 = vmax.f32 %v135_v15, %v282_v16  ;;  %v186_v28 = vld [vmem:[%s1175_s2 + $0xb0] sm:$0xff]  ;;  %v187_v33 = vld [vmem:[%s1175_s2 + $0xb8] sm:$0xff] }
  0x20   :  { %v234_v22 = vld [vmem:[%s1176_s3 + $0xa8] sm:$0xff]  ;;  %v137_v27 = vmax.f32 %v39_v23, %v88_v24  ;;  %v235_v29 = vld [vmem:[%s1176_s3 + $0xb0] sm:$0xff]  ;;  %v236_v34 = vld [vmem:[%s1176_s3 + $0xb8] sm:$0xff]  ;;  %v138_v36 = vmax.f32 %v40_v30, %v89_v32 }
  0x21   :  { %378 = vst [vmem:[%s1177_s4 + $0x90] sm:$0xff] %v329_v14  ;;  %v283_v26 = vmax.f32 %v185_v19, %v234_v22  ;;  %v284_v31 = vmax.f32 %v186_v28, %v235_v29  ;;  %v285_v37 = vmax.f32 %v187_v33, %v236_v34  ;;  %v41_v38 = vld [vmem:[%s1173_s0 + $0xc0] sm:$0xff]  ;;  %v42_v44 = vld [vmem:[%s1173_s0 + $0xc8] sm:$0xff]  ;;  %v43_v51 = vld [vmem:[%s1173_s0 + $0xd0] sm:$0xff] }
  0x22   :  { %379 = vst [vmem:[%s1177_s4 + $0x98] sm:$0xff] %v330_v20  ;;  %v90_v39 = vld [vmem:[%s1174_s1 + $0xc0] sm:$0xff]  ;;  %v91_v45 = vld [vmem:[%s1174_s1 + $0xc8] sm:$0xff]  ;;  %v92_v53 = vld [vmem:[%s1174_s1 + $0xd0] sm:$0xff] }
  0x23   :  { %380 = vst [vmem:[%s1177_s4 + $0xa0] sm:$0xff] %v331_v25  ;;  %v332_v35 = vmax.f32 %v136_v21, %v283_v26  ;;  %v188_v40 = vld [vmem:[%s1175_s2 + $0xc0] sm:$0xff]  ;;  %v333_v41 = vmax.f32 %v137_v27, %v284_v31  ;;  %v139_v42 = vmax.f32 %v41_v38, %v90_v39  ;;  %v334_v46 = vmax.f32 %v138_v36, %v285_v37  ;;  %v189_v49 = vld [vmem:[%s1175_s2 + $0xc8] sm:$0xff]  ;;  %v190_v54 = vld [vmem:[%s1175_s2 + $0xd0] sm:$0xff] }
  0x24   :  { %v237_v43 = vld [vmem:[%s1176_s3 + $0xc0] sm:$0xff]  ;;  %v140_v48 = vmax.f32 %v42_v44, %v91_v45  ;;  %v238_v50 = vld [vmem:[%s1176_s3 + $0xc8] sm:$0xff]  ;;  %v239_v55 = vld [vmem:[%s1176_s3 + $0xd0] sm:$0xff]  ;;  %v141_v57 = vmax.f32 %v43_v51, %v92_v53 }
  0x25   :  { %381 = vst [vmem:[%s1177_s4 + $0xa8] sm:$0xff] %v332_v35  ;;  %v286_v47 = vmax.f32 %v188_v40, %v237_v43  ;;  %v287_v52 = vmax.f32 %v189_v49, %v238_v50  ;;  %v288_v58 = vmax.f32 %v190_v54, %v239_v55  ;;  %v44_v59 = vld [vmem:[%s1173_s0 + $0xd8] sm:$0xff]  ;;  %v45_v1 = vld [vmem:[%s1173_s0 + $0xe0] sm:$0xff]  ;;  %v46_v8 = vld [vmem:[%s1173_s0 + $0xe8] sm:$0xff] }
  0x26   :  { %382 = vst [vmem:[%s1177_s4 + $0xb0] sm:$0xff] %v333_v41  ;;  %v93_v60 = vld [vmem:[%s1174_s1 + $0xd8] sm:$0xff]  ;;  %v94_v2 = vld [vmem:[%s1174_s1 + $0xe0] sm:$0xff]  ;;  %v95_v10 = vld [vmem:[%s1174_s1 + $0xe8] sm:$0xff] }
  0x27   :  { %383 = vst [vmem:[%s1177_s4 + $0xb8] sm:$0xff] %v334_v46  ;;  %v335_v56 = vmax.f32 %v139_v42, %v286_v47  ;;  %v191_v61 = vld [vmem:[%s1175_s2 + $0xd8] sm:$0xff]  ;;  %v336_v62 = vmax.f32 %v140_v48, %v287_v52  ;;  %v142_v63 = vmax.f32 %v44_v59, %v93_v60  ;;  %v337_v3 = vmax.f32 %v141_v57, %v288_v58  ;;  %v192_v6 = vld [vmem:[%s1175_s2 + $0xe0] sm:$0xff]  ;;  %v193_v11 = vld [vmem:[%s1175_s2 + $0xe8] sm:$0xff] }
  0x28   :  { %v240_v0 = vld [vmem:[%s1176_s3 + $0xd8] sm:$0xff]  ;;  %v143_v5 = vmax.f32 %v45_v1, %v94_v2  ;;  %v241_v7 = vld [vmem:[%s1176_s3 + $0xe0] sm:$0xff]  ;;  %v242_v12 = vld [vmem:[%s1176_s3 + $0xe8] sm:$0xff]  ;;  %v144_v14 = vmax.f32 %v46_v8, %v95_v10 }
  0x29   :  { %384 = vst [vmem:[%s1177_s4 + $0xc0] sm:$0xff] %v335_v56  ;;  %v289_v4 = vmax.f32 %v191_v61, %v240_v0  ;;  %v290_v9 = vmax.f32 %v192_v6, %v241_v7  ;;  %v291_v15 = vmax.f32 %v193_v11, %v242_v12  ;;  %v47_v16 = vld [vmem:[%s1173_s0 + $0xf0] sm:$0xff]  ;;  %v48_v22 = vld [vmem:[%s1173_s0 + $0xf8] sm:$0xff]  ;;  %v49_v29 = vld [vmem:[%s1173_s0 + $0x100] sm:$0xff] }
  0x2a   :  { %385 = vst [vmem:[%s1177_s4 + $0xc8] sm:$0xff] %v336_v62  ;;  %v96_v17 = vld [vmem:[%s1174_s1 + $0xf0] sm:$0xff]  ;;  %v97_v23 = vld [vmem:[%s1174_s1 + $0xf8] sm:$0xff]  ;;  %v98_v31 = vld [vmem:[%s1174_s1 + $0x100] sm:$0xff] }
  0x2b   :  { %386 = vst [vmem:[%s1177_s4 + $0xd0] sm:$0xff] %v337_v3  ;;  %v338_v13 = vmax.f32 %v142_v63, %v289_v4  ;;  %v194_v18 = vld [vmem:[%s1175_s2 + $0xf0] sm:$0xff]  ;;  %v339_v19 = vmax.f32 %v143_v5, %v290_v9  ;;  %v145_v20 = vmax.f32 %v47_v16, %v96_v17  ;;  %v340_v24 = vmax.f32 %v144_v14, %v291_v15  ;;  %v195_v27 = vld [vmem:[%s1175_s2 + $0xf8] sm:$0xff]  ;;  %v196_v32 = vld [vmem:[%s1175_s2 + $0x100] sm:$0xff] }
  0x2c   :  { %v243_v21 = vld [vmem:[%s1176_s3 + $0xf0] sm:$0xff]  ;;  %v146_v26 = vmax.f32 %v48_v22, %v97_v23  ;;  %v244_v28 = vld [vmem:[%s1176_s3 + $0xf8] sm:$0xff]  ;;  %v245_v33 = vld [vmem:[%s1176_s3 + $0x100] sm:$0xff]  ;;  %v147_v35 = vmax.f32 %v49_v29, %v98_v31 }
  0x2d   :  { %387 = vst [vmem:[%s1177_s4 + $0xd8] sm:$0xff] %v338_v13  ;;  %v292_v25 = vmax.f32 %v194_v18, %v243_v21  ;;  %v293_v30 = vmax.f32 %v195_v27, %v244_v28  ;;  %v294_v36 = vmax.f32 %v196_v32, %v245_v33  ;;  %v50_v37 = vld [vmem:[%s1173_s0 + $0x108] sm:$0xff]  ;;  %v51_v43 = vld [vmem:[%s1173_s0 + $0x110] sm:$0xff]  ;;  %v52_v50 = vld [vmem:[%s1173_s0 + $0x118] sm:$0xff] }
  0x2e   :  { %388 = vst [vmem:[%s1177_s4 + $0xe0] sm:$0xff] %v339_v19  ;;  %v99_v38 = vld [vmem:[%s1174_s1 + $0x108] sm:$0xff]  ;;  %v100_v44 = vld [vmem:[%s1174_s1 + $0x110] sm:$0xff]  ;;  %v101_v52 = vld [vmem:[%s1174_s1 + $0x118] sm:$0xff] }
  0x2f   :  { %389 = vst [vmem:[%s1177_s4 + $0xe8] sm:$0xff] %v340_v24  ;;  %v341_v34 = vmax.f32 %v145_v20, %v292_v25  ;;  %v197_v39 = vld [vmem:[%s1175_s2 + $0x108] sm:$0xff]  ;;  %v342_v40 = vmax.f32 %v146_v26, %v293_v30  ;;  %v148_v41 = vmax.f32 %v50_v37, %v99_v38  ;;  %v343_v45 = vmax.f32 %v147_v35, %v294_v36  ;;  %v198_v48 = vld [vmem:[%s1175_s2 + $0x110] sm:$0xff]  ;;  %v199_v53 = vld [vmem:[%s1175_s2 + $0x118] sm:$0xff] }
  0x30   :  { %v246_v42 = vld [vmem:[%s1176_s3 + $0x108] sm:$0xff]  ;;  %v149_v47 = vmax.f32 %v51_v43, %v100_v44  ;;  %v247_v49 = vld [vmem:[%s1176_s3 + $0x110] sm:$0xff]  ;;  %v248_v54 = vld [vmem:[%s1176_s3 + $0x118] sm:$0xff]  ;;  %v150_v56 = vmax.f32 %v52_v50, %v101_v52 }
  0x31   :  { %390 = vst [vmem:[%s1177_s4 + $0xf0] sm:$0xff] %v341_v34  ;;  %v295_v46 = vmax.f32 %v197_v39, %v246_v42  ;;  %v296_v51 = vmax.f32 %v198_v48, %v247_v49  ;;  %v297_v57 = vmax.f32 %v199_v53, %v248_v54  ;;  %v53_v58 = vld [vmem:[%s1173_s0 + $0x120] sm:$0xff]  ;;  %v54_v0 = vld [vmem:[%s1173_s0 + $0x128] sm:$0xff]  ;;  %v55_v7 = vld [vmem:[%s1173_s0 + $0x130] sm:$0xff] }
  0x32   :  { %391 = vst [vmem:[%s1177_s4 + $0xf8] sm:$0xff] %v342_v40  ;;  %v102_v59 = vld [vmem:[%s1174_s1 + $0x120] sm:$0xff]  ;;  %v103_v1 = vld [vmem:[%s1174_s1 + $0x128] sm:$0xff]  ;;  %v104_v9 = vld [vmem:[%s1174_s1 + $0x130] sm:$0xff] }
  0x33   :  { %392 = vst [vmem:[%s1177_s4 + $0x100] sm:$0xff] %v343_v45  ;;  %v344_v55 = vmax.f32 %v148_v41, %v295_v46  ;;  %v200_v60 = vld [vmem:[%s1175_s2 + $0x120] sm:$0xff]  ;;  %v345_v61 = vmax.f32 %v149_v47, %v296_v51  ;;  %v151_v62 = vmax.f32 %v53_v58, %v102_v59  ;;  %v346_v2 = vmax.f32 %v150_v56, %v297_v57  ;;  %v201_v5 = vld [vmem:[%s1175_s2 + $0x128] sm:$0xff]  ;;  %v202_v10 = vld [vmem:[%s1175_s2 + $0x130] sm:$0xff] }
  0x34   :  { %v249_v63 = vld [vmem:[%s1176_s3 + $0x120] sm:$0xff]  ;;  %v152_v4 = vmax.f32 %v54_v0, %v103_v1  ;;  %v250_v6 = vld [vmem:[%s1176_s3 + $0x128] sm:$0xff]  ;;  %v251_v11 = vld [vmem:[%s1176_s3 + $0x130] sm:$0xff]  ;;  %v153_v13 = vmax.f32 %v55_v7, %v104_v9 }
  0x35   :  { %393 = vst [vmem:[%s1177_s4 + $0x108] sm:$0xff] %v344_v55  ;;  %v298_v3 = vmax.f32 %v200_v60, %v249_v63  ;;  %v299_v8 = vmax.f32 %v201_v5, %v250_v6  ;;  %v300_v14 = vmax.f32 %v202_v10, %v251_v11  ;;  %v56_v15 = vld [vmem:[%s1173_s0 + $0x138] sm:$0xff]  ;;  %v57_v21 = vld [vmem:[%s1173_s0 + $0x140] sm:$0xff]  ;;  %v58_v28 = vld [vmem:[%s1173_s0 + $0x148] sm:$0xff] }
  0x36   :  { %394 = vst [vmem:[%s1177_s4 + $0x110] sm:$0xff] %v345_v61  ;;  %v105_v16 = vld [vmem:[%s1174_s1 + $0x138] sm:$0xff]  ;;  %v106_v22 = vld [vmem:[%s1174_s1 + $0x140] sm:$0xff]  ;;  %v107_v30 = vld [vmem:[%s1174_s1 + $0x148] sm:$0xff] }
  0x37   :  { %395 = vst [vmem:[%s1177_s4 + $0x118] sm:$0xff] %v346_v2  ;;  %v347_v12 = vmax.f32 %v151_v62, %v298_v3  ;;  %v203_v17 = vld [vmem:[%s1175_s2 + $0x138] sm:$0xff]  ;;  %v348_v18 = vmax.f32 %v152_v4, %v299_v8  ;;  %v154_v19 = vmax.f32 %v56_v15, %v105_v16  ;;  %v349_v23 = vmax.f32 %v153_v13, %v300_v14  ;;  %v204_v26 = vld [vmem:[%s1175_s2 + $0x140] sm:$0xff]  ;;  %v205_v31 = vld [vmem:[%s1175_s2 + $0x148] sm:$0xff] }
  0x38   :  { %v252_v20 = vld [vmem:[%s1176_s3 + $0x138] sm:$0xff]  ;;  %v155_v25 = vmax.f32 %v57_v21, %v106_v22  ;;  %v253_v27 = vld [vmem:[%s1176_s3 + $0x140] sm:$0xff]  ;;  %v254_v32 = vld [vmem:[%s1176_s3 + $0x148] sm:$0xff]  ;;  %v156_v34 = vmax.f32 %v58_v28, %v107_v30 }
  0x39   :  { %396 = vst [vmem:[%s1177_s4 + $0x120] sm:$0xff] %v347_v12  ;;  %v301_v24 = vmax.f32 %v203_v17, %v252_v20  ;;  %v302_v29 = vmax.f32 %v204_v26, %v253_v27  ;;  %v303_v35 = vmax.f32 %v205_v31, %v254_v32  ;;  %v59_v36 = vld [vmem:[%s1173_s0 + $0x150] sm:$0xff]  ;;  %v60_v42 = vld [vmem:[%s1173_s0 + $0x158] sm:$0xff]  ;;  %v61_v49 = vld [vmem:[%s1173_s0 + $0x160] sm:$0xff] }
  0x3a   :  { %397 = vst [vmem:[%s1177_s4 + $0x128] sm:$0xff] %v348_v18  ;;  %v108_v37 = vld [vmem:[%s1174_s1 + $0x150] sm:$0xff]  ;;  %v109_v43 = vld [vmem:[%s1174_s1 + $0x158] sm:$0xff]  ;;  %v110_v51 = vld [vmem:[%s1174_s1 + $0x160] sm:$0xff] }
  0x3b   :  { %398 = vst [vmem:[%s1177_s4 + $0x130] sm:$0xff] %v349_v23  ;;  %v350_v33 = vmax.f32 %v154_v19, %v301_v24  ;;  %v206_v38 = vld [vmem:[%s1175_s2 + $0x150] sm:$0xff]  ;;  %v351_v39 = vmax.f32 %v155_v25, %v302_v29  ;;  %v157_v40 = vmax.f32 %v59_v36, %v108_v37  ;;  %v352_v44 = vmax.f32 %v156_v34, %v303_v35  ;;  %v207_v47 = vld [vmem:[%s1175_s2 + $0x158] sm:$0xff]  ;;  %v208_v52 = vld [vmem:[%s1175_s2 + $0x160] sm:$0xff] }
  0x3c   :  { %v255_v41 = vld [vmem:[%s1176_s3 + $0x150] sm:$0xff]  ;;  %v158_v46 = vmax.f32 %v60_v42, %v109_v43  ;;  %v256_v48 = vld [vmem:[%s1176_s3 + $0x158] sm:$0xff]  ;;  %v257_v53 = vld [vmem:[%s1176_s3 + $0x160] sm:$0xff]  ;;  %v159_v55 = vmax.f32 %v61_v49, %v110_v51 }
  0x3d   :  { %399 = vst [vmem:[%s1177_s4 + $0x138] sm:$0xff] %v350_v33  ;;  %v304_v45 = vmax.f32 %v206_v38, %v255_v41  ;;  %v305_v50 = vmax.f32 %v207_v47, %v256_v48  ;;  %v306_v56 = vmax.f32 %v208_v52, %v257_v53  ;;  %v62_v57 = vld [vmem:[%s1173_s0 + $0x168] sm:$0xff]  ;;  %v63_v63 = vld [vmem:[%s1173_s0 + $0x170] sm:$0xff]  ;;  %v64_v6 = vld [vmem:[%s1173_s0 + $0x178] sm:$0xff] }
  0x3e   :  { %400 = vst [vmem:[%s1177_s4 + $0x140] sm:$0xff] %v351_v39  ;;  %v111_v58 = vld [vmem:[%s1174_s1 + $0x168] sm:$0xff]  ;;  %v112_v0 = vld [vmem:[%s1174_s1 + $0x170] sm:$0xff]  ;;  %v113_v8 = vld [vmem:[%s1174_s1 + $0x178] sm:$0xff] }
  0x3f   :  { %401 = vst [vmem:[%s1177_s4 + $0x148] sm:$0xff] %v352_v44  ;;  %v353_v54 = vmax.f32 %v157_v40, %v304_v45  ;;  %v209_v59 = vld [vmem:[%s1175_s2 + $0x168] sm:$0xff]  ;;  %v354_v60 = vmax.f32 %v158_v46, %v305_v50  ;;  %v160_v61 = vmax.f32 %v62_v57, %v111_v58  ;;  %v355_v1 = vmax.f32 %v159_v55, %v306_v56  ;;  %v210_v4 = vld [vmem:[%s1175_s2 + $0x170] sm:$0xff]  ;;  %v211_v9 = vld [vmem:[%s1175_s2 + $0x178] sm:$0xff] }
  0x40   :  { %v258_v62 = vld [vmem:[%s1176_s3 + $0x168] sm:$0xff]  ;;  %v161_v3 = vmax.f32 %v63_v63, %v112_v0  ;;  %v259_v5 = vld [vmem:[%s1176_s3 + $0x170] sm:$0xff]  ;;  %v260_v10 = vld [vmem:[%s1176_s3 + $0x178] sm:$0xff]  ;;  %v162_v12 = vmax.f32 %v64_v6, %v113_v8 }
  0x41   :  { %402 = vst [vmem:[%s1177_s4 + $0x150] sm:$0xff] %v353_v54  ;;  %v307_v2 = vmax.f32 %v209_v59, %v258_v62  ;;  %v308_v7 = vmax.f32 %v210_v4, %v259_v5  ;;  %v309_v13 = vmax.f32 %v211_v9, %v260_v10  ;;  %v65_v14 = vld [vmem:[%s1173_s0 + $0x180] sm:$0xff] }
  0x42   :  { %403 = vst [vmem:[%s1177_s4 + $0x158] sm:$0xff] %v354_v60  ;;  %v114_v15 = vld [vmem:[%s1174_s1 + $0x180] sm:$0xff] }
  0x43   :  { %404 = vst [vmem:[%s1177_s4 + $0x160] sm:$0xff] %v355_v1  ;;  %v356_v11 = vmax.f32 %v160_v61, %v307_v2  ;;  %v212_v16 = vld [vmem:[%s1175_s2 + $0x180] sm:$0xff]  ;;  %v357_v17 = vmax.f32 %v161_v3, %v308_v7  ;;  %v163_v18 = vmax.f32 %v65_v14, %v114_v15  ;;  %v358_v20 = vmax.f32 %v162_v12, %v309_v13 }
  0x44   :  { %v261_v19 = vld [vmem:[%s1176_s3 + $0x180] sm:$0xff] }
  0x45   :  { %405 = vst [vmem:[%s1177_s4 + $0x168] sm:$0xff] %v356_v11  ;;  %v310_v21 = vmax.f32 %v212_v16, %v261_v19 }
  0x46   :  { %406 = vst [vmem:[%s1177_s4 + $0x170] sm:$0xff] %v357_v17 }
  0x47   :  { %407 = vst [vmem:[%s1177_s4 + $0x178] sm:$0xff] %v358_v20  ;;  %v359_v22 = vmax.f32 %v163_v18, %v310_v21 }
  0x49   :  { %408 = vst [vmem:[%s1177_s4 + $0x180] sm:$0xff] %v359_v22 }

// kernel: _lambda_.7
= control target key start
LH: loop header
LB: loop body
LE: loop exit
PB: predicated region body
PF: predicated region fallthrough
CT: control target
= control target key end

     0   :  { %vm274_vm0 = vcmask 1042432   ;;  %vm234_vm1 = vcmask 179200   ;;  %s1006_s1 = inlined_call_operand.vmem [shape: bf16[150,128], index: 1, kind: input, shape index: {}]   ;;  %s1007_s0 = inlined_call_operand.vmem [shape: bf16[200,150], index: 0, kind: input, shape index: {}]   ;;  %s1008_s2 = inlined_call_operand.vmem [shape: f32[1,128], index: 2, kind: input, shape index: {}]   ;;  %s1009_s3 = inlined_call_operand.vmem [shape: f32[200,128], index: 3, kind: output, shape index: {}]  }
   0x1   :  { %v654_v0 = vld [vmem:[%s1006_s1 + $0x38] sm:$0xff]  ;;  %v58_v1 = vld [vmem:[%s1006_s1 + $0x48] sm:$0x7]  ;;  %v653_v3 = vld [vmem:[%s1006_s1 + $0x30] sm:$0xff] }
   0x2   :  { %v214_v2 = vunpack.c.l.b16 %v58_v1  ;;  %278 = vmatpush.bf16.msra.mxu0 %v654_v0  ;;  %656 = vmatpush.bf16.msra.mxu2 %v654_v0  ;;  %v655_v6 = vld [vmem:[%s1006_s1 + $0x40] sm:$0xff]  ;;  %v652_v7 = vld [vmem:[%s1006_s1 + $0x28] sm:$0xff]  ;;  %v650_v12 = vld [vmem:[%s1006_s1 + $0x18] sm:$0xff] }
   0x3   :  { %v623_v8 = vld [vmem:[%s1007_s0 + $0x4] sm:$0xf]  ;;  %v482_v9 = vld [vmem:[%s1007_s0 + $0x8] sm:$0xf0]  ;;  %v649_v13 = vld [vmem:[%s1006_s1 + $0x10] sm:$0xff] }
   0x4   :  { %v224_v4 = vpack.c.b16 %v214_v2, %v214_v2  ;;  %v485_v10 = vor.u32 %v623_v8, %v482_v9  ;;  %v651_v11 = vld [vmem:[%s1006_s1 + $0x20] sm:$0xff]  ;;  %v546_v15 = vld [vmem:[%s1007_s0 + $0x88] sm:$0xf0]  ;;  %v625_v18 = vld [vmem:[%s1007_s0 + $0x14] sm:$0xf] }
   0x5   :  { %v639_v14 = vld [vmem:[%s1007_s0 + $0x84] sm:$0xf]  ;;  %v648_v17 = vld [vmem:[%s1006_s1 + $0x8] sm:$0xff]  ;;  %v490_v19 = vld [vmem:[%s1007_s0 + $0x18] sm:$0xf0] }
   0x6   :  { %v276_v5 = vsel %vm274_vm0, %v224_v4, 0  ;;  %279 = vmatpush.bf16.msra.mxu0 %v653_v3  ;;  %657 = vmatpush.bf16.msra.mxu2 %v653_v3  ;;  %v549_v16 = vor.u32 %v639_v14, %v546_v15  ;;  %v493_v20 = vor.u32 %v625_v18, %v490_v19  ;;  %v647_v21 = vld [vmem:[%s1006_s1] sm:$0xff]  ;;  %v624_v23 = vld [vmem:[%s1007_s0 + $0x4] sm:$0xf0]  ;;  %v641_v28 = vld [vmem:[%s1007_s0 + $0x94] sm:$0xf] }
   0x7   :  { %357 = vmatpush.bf16.msra.mxu1 %v276_v5  ;;  %664 = vmatpush.bf16.msra.mxu3 %v276_v5  ;;  %v480_v22 = vld [vmem:[%s1007_s0] sm:$0xf]  ;;  %v636_v25 = vld [vmem:[%s1007_s0 + $0x64] sm:$0xf0]  ;;  %v554_v29 = vld [vmem:[%s1007_s0 + $0x98] sm:$0xf0] }
   0x8   :  { %v528_v24 = vld [vmem:[%s1007_s0 + $0x60] sm:$0xf]  ;;  %v481_v26 = vor.u32 %v624_v23, %v480_v22  ;;  %v557_v30 = vor.u32 %v641_v28, %v554_v29  ;;  %v627_v31 = vld [vmem:[%s1007_s0 + $0x24] sm:$0xf]  ;;  %v498_v32 = vld [vmem:[%s1007_s0 + $0x28] sm:$0xf0] }
   0x9   :  { %v529_v27 = vor.u32 %v636_v25, %v528_v24  ;;  %v501_v33 = vor.u32 %v627_v31, %v498_v32  ;;  %v488_v34 = vld [vmem:[%s1007_s0 + $0x10] sm:$0xf]  ;;  %v626_v35 = vld [vmem:[%s1007_s0 + $0x14] sm:$0xf0]  ;;  %v643_v40 = vld [vmem:[%s1007_s0 + $0xa4] sm:$0xf] }
   0xa   :  { %280 = vmatpush.bf16.msra.mxu0 %v652_v7  ;;  %658 = vmatpush.bf16.msra.mxu2 %v652_v7  ;;  %v536_v36 = vld [vmem:[%s1007_s0 + $0x70] sm:$0xf]  ;;  %v638_v37 = vld [vmem:[%s1007_s0 + $0x74] sm:$0xf0]  ;;  %v489_v38 = vor.u32 %v626_v35, %v488_v34  ;;  %v562_v41 = vld [vmem:[%s1007_s0 + $0xa8] sm:$0xf0] }
   0xb   :  { %358 = vmatpush.bf16.msra.mxu1 %v655_v6  ;;  %665 = vmatpush.bf16.msra.mxu3 %v655_v6  ;;  %v537_v39 = vor.u32 %v638_v37, %v536_v36  ;;  %v565_v42 = vor.u32 %v643_v40, %v562_v41  ;;  %v629_v43 = vld [vmem:[%s1007_s0 + $0x34] sm:$0xf]  ;;  %v506_v44 = vld [vmem:[%s1007_s0 + $0x38] sm:$0xf0]  ;;  %v496_v46 = vld [vmem:[%s1007_s0 + $0x20] sm:$0xf] }
   0xc   :  { %v509_v45 = vor.u32 %v629_v43, %v506_v44  ;;  %v628_v47 = vld [vmem:[%s1007_s0 + $0x24] sm:$0xf0]  ;;  %v544_v48 = vld [vmem:[%s1007_s0 + $0x80] sm:$0xf]  ;;  %v645_v52 = vld [vmem:[%s1007_s0 + $0xb4] sm:$0xf] }
   0xd   :  { %v640_v49 = vld [vmem:[%s1007_s0 + $0x84] sm:$0xf0]  ;;  %v497_v50 = vor.u32 %v628_v47, %v496_v46  ;;  %v570_v53 = vld [vmem:[%s1007_s0 + $0xb8] sm:$0xf0]  ;;  %v631_v55 = vld [vmem:[%s1007_s0 + $0x44] sm:$0xf] }
   0xe   :  { %610 = vmatmul.msk.bf16.vlgmr.msra.gmra.mxu1 %vm234_vm1, %v485_v10  ;;  %281 = vmatpush.bf16.msra.mxu0 %v651_v11  ;;  %v545_v51 = vor.u32 %v640_v49, %v544_v48  ;;  %v573_v54 = vor.u32 %v645_v52, %v570_v53  ;;  %v514_v56 = vld [vmem:[%s1007_s0 + $0x48] sm:$0xf0]  ;;  %v504_v58 = vld [vmem:[%s1007_s0 + $0x30] sm:$0xf]  ;;  %v630_v59 = vld [vmem:[%s1007_s0 + $0x34] sm:$0xf0] }
   0xf   :  { %659 = vmatpush.bf16.msra.mxu2 %v651_v11  ;;  %618 = vmatmul.msk.bf16.vlgmr.msra.gmra.mxu3 %vm234_vm1, %v549_v16  ;;  %v517_v57 = vor.u32 %v631_v55, %v514_v56  ;;  %v552_v60 = vld [vmem:[%s1007_s0 + $0x90] sm:$0xf]  ;;  %v642_v61 = vld [vmem:[%s1007_s0 + $0x94] sm:$0xf0]  ;;  %v505_v62 = vor.u32 %v630_v59, %v504_v58  ;;  %v39_v0 = vld [vmem:[%s1007_s0 + $0xc0] sm:$0xff] }
  0x10   :  { %v553_v63 = vor.u32 %v642_v61, %v552_v60  ;;  %v137_v1 = vunpack.c.h.b16 %v39_v0  ;;  %v633_v3 = vld [vmem:[%s1007_s0 + $0x54] sm:$0xf]  ;;  %v522_v4 = vld [vmem:[%s1007_s0 + $0x58] sm:$0xf0]  ;;  %v512_v6 = vld [vmem:[%s1007_s0 + $0x40] sm:$0xf]  ;;  %v136_v24 = vunpack.c.l.b16 %v39_v0 }
  0x11   :  { %v525_v5 = vor.u32 %v633_v3, %v522_v4  ;;  %v632_v7 = vld [vmem:[%s1007_s0 + $0x44] sm:$0xf0]  ;;  %v560_v8 = vld [vmem:[%s1007_s0 + $0xa0] sm:$0xf]  ;;  %v520_v15 = vld [vmem:[%s1007_s0 + $0x50] sm:$0xf] }
  0x12   :  { %282 = vmatpush.bf16.msra.mxu0 %v650_v12  ;;  %v163_v2 = vpack.c.b16 %v137_v1, %v137_v1  ;;  %v644_v9 = vld [vmem:[%s1007_s0 + $0xa4] sm:$0xf0]  ;;  %v513_v10 = vor.u32 %v632_v7, %v512_v6  ;;  %v634_v16 = vld [vmem:[%s1007_s0 + $0x54] sm:$0xf0]  ;;  %v538_v22 = vld [vmem:[%s1007_s0 + $0x78] sm:$0xf0]  ;;  %v162_v25 = vpack.c.b16 %v136_v24, %v136_v24 }
  0x13   :  { %660 = vmatpush.bf16.msra.mxu2 %v650_v12  ;;  %v561_v11 = vor.u32 %v644_v9, %v560_v8  ;;  %v635_v12 = vld [vmem:[%s1007_s0 + $0x64] sm:$0xf]  ;;  %v646_v18 = vld [vmem:[%s1007_s0 + $0xb4] sm:$0xf0]  ;;  %v521_v19 = vor.u32 %v634_v16, %v520_v15  ;;  %v880_v29 = vld [vmem:[%s1008_s2] ss:$0 sm:$0xff] }
  0x16   :  { %283 = vmatpush.bf16.msra.mxu0 %v649_v13 }
  0x17   :  { %661 = vmatpush.bf16.msra.mxu2 %v649_v13  ;;  %v530_v13 = vld [vmem:[%s1007_s0 + $0x68] sm:$0xf0] }
  0x18   :  { %v533_v14 = vor.u32 %v635_v12, %v530_v13 }
  0x1a   :  { %284 = vmatpush.bf16.msra.mxu0 %v648_v17 }
  0x1b   :  { %662 = vmatpush.bf16.msra.mxu2 %v648_v17  ;;  %v568_v17 = vld [vmem:[%s1007_s0 + $0xb0] sm:$0xf] }
  0x1e   :  { %611 = vmatmul.msk.bf16.gmra.mxu1 %vm234_vm1, %v493_v20  ;;  %285 = vmatpush.bf16.msra.mxu0 %v647_v21  ;;  %v569_v20 = vor.u32 %v646_v18, %v568_v17 }
  0x1f   :  { %663 = vmatpush.bf16.msra.mxu2 %v647_v21  ;;  %619 = vmatmul.msk.bf16.gmra.mxu3 %vm234_vm1, %v557_v30  ;;  %v637_v21 = vld [vmem:[%s1007_s0 + $0x74] sm:$0xf] }
  0x20   :  { %v541_v23 = vor.u32 %v637_v21, %v538_v22 }
  0x21   :  { %286 = vmatmul.bf16.vlgmr.msra.gmra.mxu0 %v481_v26 }
  0x22   :  { %316 = vmatmul.bf16.vlgmr.msra.gmra.mxu2 %v529_v27 }
  0x2e   :  { %612 = vmatmul.msk.bf16.gmra.mxu1 %vm234_vm1, %v501_v33 }
  0x2f   :  { %620 = vmatmul.msk.bf16.gmra.mxu3 %vm234_vm1, %v565_v42 }
  0x31   :  { %291 = vmatmul.bf16.gmra.mxu0 %v489_v38 }
  0x32   :  { %321 = vmatmul.bf16.gmra.mxu2 %v537_v39 }
  0x3e   :  { %613 = vmatmul.msk.bf16.gmra.mxu1 %vm234_vm1, %v509_v45 }
  0x3f   :  { %621 = vmatmul.msk.bf16.gmra.mxu3 %vm234_vm1, %v573_v54 }
  0x41   :  { %296 = vmatmul.bf16.gmra.mxu0 %v497_v50 }
  0x42   :  { %326 = vmatmul.bf16.gmra.mxu2 %v545_v51 }
  0x4e   :  { %614 = vmatmul.msk.bf16.gmra.mxu1 %vm234_vm1, %v517_v57 }
  0x4f   :  { %622 = vmatmul.msk.bf16.gmra.mxu3 %vm234_vm1, %v163_v2 }
  0x51   :  { %301 = vmatmul.bf16.gmra.mxu0 %v505_v62 }
  0x52   :  { %331 = vmatmul.bf16.gmra.mxu2 %v553_v63 }
  0x5e   :  { %615 = vmatmul.msk.bf16.gmra.mxu1 %vm234_vm1, %v525_v5 }
  0x61   :  { %306 = vmatmul.bf16.gmra.mxu0 %v513_v10 }
  0x62   :  { %336 = vmatmul.bf16.gmra.mxu2 %v561_v11 }
  0x6e   :  { %616 = vmatmul.msk.bf16.gmra.mxu1 %vm234_vm1, %v533_v14 }
  0x71   :  { %311 = vmatmul.bf16.gmra.mxu0 %v521_v19 }
  0x72   :  { %341 = vmatmul.bf16.gmra.mxu2 %v569_v20 }
  0x7e   :  { %617 = vmatmul.msk.bf16.gmra.mxu1 %vm234_vm1, %v541_v23 }
  0x82   :  { %346 = vmatmul.bf16.gmra.mxu2 %v162_v25 }
  0x8b   :  { %v360_v26 = vpop.f32.mrf.mxu1 }
  0x92   :  { %v400_v30 = vpop.f32.mrf.mxu3 }
  0x93   :  { %v362_v27 = vpop.f32.mrf.mxu1 }
  0x9a   :  { %v402_v37 = vpop.f32.mrf.mxu3 }
  0x9b   :  { %v365_v28 = vpop.f32.mrf.mxu1 }
  0x9e   :  { %v287_v31 = vpop.f32.mrf.mxu0 }
  0x9f   :  { %v288_v32 = vadd.f32 %v880_v29, %v287_v31 }
  0xa1   :  { %v361_v33 = vadd.f32 %v360_v26, %v288_v32 }
  0xa2   :  { %v405_v44 = vpop.f32.mrf.mxu3 }
  0xa3   :  { %v367_v34 = vpop.f32.mrf.mxu1  ;;  %v424_v35 = vmax.f32 %v361_v33, 0.0 }
  0xa5   :  { %449 = vst [vmem:[%s1009_s3] sm:$0xff] %v424_v35  ;;  %v886_v36 = vpop.f32.mrf.mxu2 }
  0xa6   :  { %v289_v38 = vpop.f32.mrf.mxu0 }
  0xa7   :  { %v290_v39 = vadd.f32 %v880_v29, %v289_v38 }
  0xa9   :  { %v363_v40 = vadd.f32 %v362_v27, %v290_v39 }
  0xaa   :  { %v407_v51 = vpop.f32.mrf.mxu3 }
  0xab   :  { %v370_v41 = vpop.f32.mrf.mxu1  ;;  %v425_v42 = vmax.f32 %v363_v40, 0.0 }
  0xad   :  { %450 = vst [vmem:[%s1009_s3 + $0x8] sm:$0xff] %v425_v42  ;;  %v892_v43 = vpop.f32.mrf.mxu2 }
  0xae   :  { %v292_v45 = vpop.f32.mrf.mxu0 }
  0xaf   :  { %v293_v46 = vadd.f32 %v880_v29, %v292_v45 }
  0xb1   :  { %v366_v47 = vadd.f32 %v365_v28, %v293_v46 }
  0xb2   :  { %v410_v58 = vpop.f32.mrf.mxu3 }
  0xb3   :  { %v372_v48 = vpop.f32.mrf.mxu1  ;;  %v426_v49 = vmax.f32 %v366_v47, 0.0 }
  0xb5   :  { %451 = vst [vmem:[%s1009_s3 + $0x10] sm:$0xff] %v426_v49  ;;  %v898_v50 = vpop.f32.mrf.mxu2  ;;  %v318_v49 = vadd.f32 %v880_v29, %v886_v36 }
  0xb6   :  { %v294_v52 = vpop.f32.mrf.mxu0 }
  0xb7   :  { %v295_v53 = vadd.f32 %v880_v29, %v294_v52 }
  0xb9   :  { %v368_v54 = vadd.f32 %v367_v34, %v295_v53 }
  0xba   :  { %v910_v1 = vpop.f32.mrf.mxu3 }
  0xbb   :  { %v375_v55 = vpop.f32.mrf.mxu1  ;;  %v427_v56 = vmax.f32 %v368_v54, 0.0 }
  0xbd   :  { %452 = vst [vmem:[%s1009_s3 + $0x18] sm:$0xff] %v427_v56  ;;  %v904_v57 = vpop.f32.mrf.mxu2 }
  0xbe   :  { %v297_v59 = vpop.f32.mrf.mxu0 }
  0xbf   :  { %v298_v60 = vadd.f32 %v880_v29, %v297_v59 }
  0xc1   :  { %v371_v61 = vadd.f32 %v370_v41, %v298_v60 }
  0xc2   :  { %v920_v11 = vpop.f32.mrf.mxu3 }
  0xc3   :  { %v377_v62 = vpop.f32.mrf.mxu1  ;;  %v428_v63 = vmax.f32 %v371_v61, 0.0 }
  0xc5   :  { %453 = vst [vmem:[%s1009_s3 + $0x20] sm:$0xff] %v428_v63  ;;  %v327_v0 = vpop.f32.mrf.mxu2 }
  0xc6   :  { %v328_v2 = vadd.f32 %v880_v29, %v327_v0  ;;  %v299_v3 = vpop.f32.mrf.mxu0 }
  0xc7   :  { %v300_v4 = vadd.f32 %v880_v29, %v299_v3 }
  0xc8   :  { %v401_v5 = vadd.f32 %v400_v30, %v328_v2 }
  0xc9   :  { %v373_v6 = vadd.f32 %v372_v48, %v300_v4 }
  0xca   :  { %v440_v7 = vmax.f32 %v401_v5, 0.0  ;;  %v930_v21 = vpop.f32.mrf.mxu3 }
  0xcb   :  { %v380_v8 = vpop.f32.mrf.mxu1  ;;  %v429_v9 = vmax.f32 %v373_v6, 0.0 }
  0xcc   :  { %465 = vst [vmem:[%s1009_s3 + $0x80] sm:$0xff] %v440_v7 }
  0xcd   :  { %454 = vst [vmem:[%s1009_s3 + $0x28] sm:$0xff] %v429_v9  ;;  %v329_v10 = vpop.f32.mrf.mxu2  ;;  %v323_v9 = vadd.f32 %v880_v29, %v898_v50 }
  0xce   :  { %v330_v12 = vadd.f32 %v880_v29, %v329_v10  ;;  %v302_v13 = vpop.f32.mrf.mxu0 }
  0xcf   :  { %v303_v14 = vadd.f32 %v880_v29, %v302_v13 }
  0xd0   :  { %v403_v15 = vadd.f32 %v402_v37, %v330_v12 }
  0xd1   :  { %v376_v16 = vadd.f32 %v375_v55, %v303_v14 }
  0xd2   :  { %v441_v17 = vmax.f32 %v403_v15, 0.0  ;;  %v940_v32 = vpop.f32.mrf.mxu3 }
  0xd3   :  { %v382_v18 = vpop.f32.mrf.mxu1  ;;  %v430_v19 = vmax.f32 %v376_v16, 0.0 }
  0xd4   :  { %466 = vst [vmem:[%s1009_s3 + $0x88] sm:$0xff] %v441_v17 }
  0xd5   :  { %455 = vst [vmem:[%s1009_s3 + $0x30] sm:$0xff] %v430_v19  ;;  %v332_v20 = vpop.f32.mrf.mxu2 }
  0xd6   :  { %v333_v22 = vadd.f32 %v880_v29, %v332_v20  ;;  %v304_v23 = vpop.f32.mrf.mxu0 }
  0xd7   :  { %v305_v24 = vadd.f32 %v880_v29, %v304_v23 }
  0xd8   :  { %v406_v25 = vadd.f32 %v405_v44, %v333_v22 }
  0xd9   :  { %v378_v26 = vadd.f32 %v377_v62, %v305_v24  ;;  %v320_v62 = vadd.f32 %v880_v29, %v892_v43 }
  0xda   :  { %v442_v27 = vmax.f32 %v406_v25, 0.0  ;;  %v422_v44 = vpop.f32.mrf.mxu3 }
  0xdb   :  { %v385_v28 = vpop.f32.mrf.mxu1  ;;  %v431_v30 = vmax.f32 %v378_v26, 0.0 }
  0xdc   :  { %467 = vst [vmem:[%s1009_s3 + $0x90] sm:$0xff] %v442_v27 }
  0xdd   :  { %456 = vst [vmem:[%s1009_s3 + $0x38] sm:$0xff] %v431_v30  ;;  %v334_v31 = vpop.f32.mrf.mxu2 }
  0xde   :  { %v335_v33 = vadd.f32 %v880_v29, %v334_v31  ;;  %v307_v34 = vpop.f32.mrf.mxu0 }
  0xdf   :  { %v308_v35 = vadd.f32 %v880_v29, %v307_v34 }
  0xe0   :  { %v408_v37 = vadd.f32 %v407_v51, %v335_v33 }
  0xe1   :  { %v381_v38 = vadd.f32 %v380_v8, %v308_v35 }
  0xe2   :  { %v443_v39 = vmax.f32 %v408_v37, 0.0 }
  0xe3   :  { %v387_v40 = vpop.f32.mrf.mxu1  ;;  %v432_v41 = vmax.f32 %v381_v38, 0.0 }
  0xe4   :  { %468 = vst [vmem:[%s1009_s3 + $0x98] sm:$0xff] %v443_v39 }
  0xe5   :  { %457 = vst [vmem:[%s1009_s3 + $0x40] sm:$0xff] %v432_v41  ;;  %v337_v42 = vpop.f32.mrf.mxu2 }
  0xe6   :  { %v338_v45 = vadd.f32 %v880_v29, %v337_v42  ;;  %v309_v46 = vpop.f32.mrf.mxu0 }
  0xe7   :  { %v310_v47 = vadd.f32 %v880_v29, %v309_v46 }
  0xe8   :  { %v411_v48 = vadd.f32 %v410_v58, %v338_v45 }
  0xe9   :  { %v383_v51 = vadd.f32 %v382_v18, %v310_v47  ;;  %v325_v18 = vadd.f32 %v880_v29, %v904_v57 }
  0xea   :  { %v444_v52 = vmax.f32 %v411_v48, 0.0 }
  0xeb   :  { %v390_v53 = vpop.f32.mrf.mxu1  ;;  %v433_v54 = vmax.f32 %v383_v51, 0.0 }
  0xec   :  { %v391_v55 = vadd.f32 %v390_v53, %v318_v49  ;;  %469 = vst [vmem:[%s1009_s3 + $0xa0] sm:$0xff] %v444_v52 }
  0xed   :  { %458 = vst [vmem:[%s1009_s3 + $0x48] sm:$0xff] %v433_v54  ;;  %v339_v59 = vpop.f32.mrf.mxu2 }
  0xee   :  { %v436_v56 = vmax.f32 %v391_v55, 0.0  ;;  %v340_v58 = vadd.f32 %v880_v29, %v339_v59  ;;  %v312_v60 = vpop.f32.mrf.mxu0 }
  0xef   :  { %v313_v36 = vadd.f32 %v880_v29, %v312_v60 }
  0xf0   :  { %461 = vst [vmem:[%s1009_s3 + $0x60] sm:$0xff] %v436_v56  ;;  %v413_v61 = vadd.f32 %v910_v1, %v340_v58 }
  0xf1   :  { %v386_v63 = vadd.f32 %v385_v28, %v313_v36 }
  0xf2   :  { %v445_v0 = vmax.f32 %v413_v61, 0.0 }
  0xf3   :  { %v392_v2 = vpop.f32.mrf.mxu1  ;;  %v434_v3 = vmax.f32 %v386_v63, 0.0 }
  0xf4   :  { %v393_v4 = vadd.f32 %v392_v2, %v320_v62  ;;  %470 = vst [vmem:[%s1009_s3 + $0xa8] sm:$0xff] %v445_v0 }
  0xf5   :  { %459 = vst [vmem:[%s1009_s3 + $0x50] sm:$0xff] %v434_v3  ;;  %v342_v6 = vpop.f32.mrf.mxu2 }
  0xf6   :  { %v437_v5 = vmax.f32 %v393_v4, 0.0  ;;  %v343_v1 = vadd.f32 %v880_v29, %v342_v6  ;;  %v314_v7 = vpop.f32.mrf.mxu0 }
  0xf7   :  { %v315_v43 = vadd.f32 %v880_v29, %v314_v7 }
  0xf8   :  { %462 = vst [vmem:[%s1009_s3 + $0x68] sm:$0xff] %v437_v5  ;;  %v416_v8 = vadd.f32 %v920_v11, %v343_v1 }
  0xf9   :  { %v388_v10 = vadd.f32 %v387_v40, %v315_v43 }
  0xfa   :  { %v446_v12 = vmax.f32 %v416_v8, 0.0 }
  0xfb   :  { %v395_v13 = vpop.f32.mrf.mxu1  ;;  %v435_v14 = vmax.f32 %v388_v10, 0.0 }
  0xfc   :  { %v396_v15 = vadd.f32 %v395_v13, %v323_v9  ;;  %471 = vst [vmem:[%s1009_s3 + $0xb0] sm:$0xff] %v446_v12 }
  0xfd   :  { %460 = vst [vmem:[%s1009_s3 + $0x58] sm:$0xff] %v435_v14  ;;  %v344_v17 = vpop.f32.mrf.mxu2 }
  0xfe   :  { %v438_v16 = vmax.f32 %v396_v15, 0.0  ;;  %v345_v11 = vadd.f32 %v880_v29, %v344_v17 }
 0x100   :  { %463 = vst [vmem:[%s1009_s3 + $0x70] sm:$0xff] %v438_v16  ;;  %v418_v50 = vadd.f32 %v930_v21, %v345_v11 }
 0x102   :  { %v447_v19 = vmax.f32 %v418_v50, 0.0 }
 0x103   :  { %v397_v20 = vpop.f32.mrf.mxu1 }
 0x104   :  { %v398_v22 = vadd.f32 %v397_v20, %v325_v18  ;;  %472 = vst [vmem:[%s1009_s3 + $0xb8] sm:$0xff] %v447_v19 }
 0x105   :  { %v347_v24 = vpop.f32.mrf.mxu2 }
 0x106   :  { %v439_v23 = vmax.f32 %v398_v22, 0.0  ;;  %v348_v25 = vadd.f32 %v880_v29, %v347_v24 }
 0x108   :  { %464 = vst [vmem:[%s1009_s3 + $0x78] sm:$0xff] %v439_v23  ;;  %v421_v21 = vadd.f32 %v940_v32, %v348_v25 }
 0x10a   :  { %v448_v26 = vmax.f32 %v421_v21, 0.0 }
 0x10c   :  { %473 = vst [vmem:[%s1009_s3 + $0xc0] sm:$0xff] %v448_v26 }
 0x10d   :  { %v349_v57 = vpop.f32.mrf.mxu2 }

// kernel: _lambda_.8
= control target key start
LH: loop header
LB: loop body
LE: loop exit
PB: predicated region body
PF: predicated region fallthrough
CT: control target
= control target key end

     0   :  { %s207_s0 = inlined_call_operand.vmem [shape: f32[50,128], index: 0, kind: input, shape index: {}]   ;;  %s208_s1 = inlined_call_operand.vmem [shape: f32[50,128], index: 1, kind: input, shape index: {}]   ;;  %s209_s2 = inlined_call_operand.vmem [shape: f32[50,128], index: 2, kind: input, shape index: {}]   ;;  %s210_s3 = inlined_call_operand.vmem [shape: f32[50,128], index: 3, kind: input, shape index: {}]   ;;  %s211_s4 = inlined_call_operand.vmem [shape: f32[50,128], index: 4, kind: output, shape index: {}]  }
   0x1   :  { %v17_v0 = vld [vmem:[%s207_s0] sm:$0xff]  ;;  %v18_v5 = vld [vmem:[%s207_s0 + $0x8] sm:$0xff]  ;;  %v19_v11 = vld [vmem:[%s207_s0 + $0x10] sm:$0xff] }
   0x2   :  { %v24_v1 = vld [vmem:[%s208_s1] sm:$0xff]  ;;  %v25_v6 = vld [vmem:[%s208_s1 + $0x8] sm:$0xff]  ;;  %v26_v13 = vld [vmem:[%s208_s1 + $0x10] sm:$0xff] }
   0x3   :  { %v38_v2 = vld [vmem:[%s209_s2] sm:$0xff]  ;;  %v31_v3 = vmax.f32 %v17_v0, %v24_v1  ;;  %v32_v8 = vmax.f32 %v18_v5, %v25_v6  ;;  %v39_v9 = vld [vmem:[%s209_s2 + $0x8] sm:$0xff]  ;;  %v40_v14 = vld [vmem:[%s209_s2 + $0x10] sm:$0xff]  ;;  %v33_v17 = vmax.f32 %v19_v11, %v26_v13 }
   0x4   :  { %v45_v4 = vld [vmem:[%s210_s3] sm:$0xff]  ;;  %v46_v10 = vld [vmem:[%s210_s3 + $0x8] sm:$0xff]  ;;  %v47_v15 = vld [vmem:[%s210_s3 + $0x10] sm:$0xff] }
   0x5   :  { %v52_v7 = vmax.f32 %v38_v2, %v45_v4  ;;  %v53_v12 = vmax.f32 %v39_v9, %v46_v10  ;;  %v54_v18 = vmax.f32 %v40_v14, %v47_v15  ;;  %v20_v19 = vld [vmem:[%s207_s0 + $0x18] sm:$0xff]  ;;  %v21_v25 = vld [vmem:[%s207_s0 + $0x20] sm:$0xff]  ;;  %v22_v32 = vld [vmem:[%s207_s0 + $0x28] sm:$0xff] }
   0x6   :  { %v27_v20 = vld [vmem:[%s208_s1 + $0x18] sm:$0xff]  ;;  %v28_v26 = vld [vmem:[%s208_s1 + $0x20] sm:$0xff]  ;;  %v29_v34 = vld [vmem:[%s208_s1 + $0x28] sm:$0xff] }
   0x7   :  { %v59_v16 = vmax.f32 %v31_v3, %v52_v7  ;;  %v41_v21 = vld [vmem:[%s209_s2 + $0x18] sm:$0xff]  ;;  %v60_v22 = vmax.f32 %v32_v8, %v53_v12  ;;  %v34_v23 = vmax.f32 %v20_v19, %v27_v20  ;;  %v61_v27 = vmax.f32 %v33_v17, %v54_v18  ;;  %v42_v30 = vld [vmem:[%s209_s2 + $0x20] sm:$0xff]  ;;  %v43_v35 = vld [vmem:[%s209_s2 + $0x28] sm:$0xff] }
   0x8   :  { %v48_v24 = vld [vmem:[%s210_s3 + $0x18] sm:$0xff]  ;;  %v35_v29 = vmax.f32 %v21_v25, %v28_v26  ;;  %v49_v31 = vld [vmem:[%s210_s3 + $0x20] sm:$0xff]  ;;  %v50_v36 = vld [vmem:[%s210_s3 + $0x28] sm:$0xff]  ;;  %v36_v38 = vmax.f32 %v22_v32, %v29_v34 }
   0x9   :  { %66 = vst [vmem:[%s211_s4] sm:$0xff] %v59_v16  ;;  %v55_v28 = vmax.f32 %v41_v21, %v48_v24  ;;  %v56_v33 = vmax.f32 %v42_v30, %v49_v31  ;;  %v57_v39 = vmax.f32 %v43_v35, %v50_v36  ;;  %v23_v40 = vld [vmem:[%s207_s0 + $0x30] sm:$0x3] }
   0xa   :  { %67 = vst [vmem:[%s211_s4 + $0x8] sm:$0xff] %v60_v22  ;;  %v30_v41 = vld [vmem:[%s208_s1 + $0x30] sm:$0x3] }
   0xb   :  { %68 = vst [vmem:[%s211_s4 + $0x10] sm:$0xff] %v61_v27  ;;  %v62_v37 = vmax.f32 %v34_v23, %v55_v28  ;;  %v63_v42 = vmax.f32 %v35_v29, %v56_v33  ;;  %v37_v43 = vmax.f32 %v23_v40, %v30_v41  ;;  %v44_v44 = vld [vmem:[%s209_s2 + $0x30] sm:$0x3]  ;;  %v64_v46 = vmax.f32 %v36_v38, %v57_v39 }
   0xc   :  { %v51_v45 = vld [vmem:[%s210_s3 + $0x30] sm:$0x3] }
   0xd   :  { %69 = vst [vmem:[%s211_s4 + $0x18] sm:$0xff] %v62_v37  ;;  %v58_v47 = vmax.f32 %v44_v44, %v51_v45 }
   0xe   :  { %70 = vst [vmem:[%s211_s4 + $0x20] sm:$0xff] %v63_v42 }
   0xf   :  { %71 = vst [vmem:[%s211_s4 + $0x28] sm:$0xff] %v64_v46  ;;  %v65_v48 = vmax.f32 %v37_v43, %v58_v47 }
  0x11   :  { %72 = vst [vmem:[%s211_s4 + $0x30] sm:$0x3] %v65_v48 }

// kernel: _lambda_.9
= control target key start
LH: loop header
LB: loop body
LE: loop exit
PB: predicated region body
PF: predicated region fallthrough
CT: control target
= control target key end

     0   :  { %s895_s0 = inlined_call_operand.vmem [shape: bf16[2,400], index: 0, kind: input, shape index: {}]   ;;  %s896_s1 = inlined_call_operand.vmem [shape: bf16[400,128], index: 1, kind: input, shape index: {}]   ;;  %s897_s2 = inlined_call_operand.vmem [shape: f32[1,128], index: 2, kind: input, shape index: {}]   ;;  %s898_s3 = inlined_call_operand.vmem [shape: bf16[128,128], index: 3, kind: input, shape index: {}]   ;;  %s899_s4 = inlined_call_operand.vmem [shape: f32[1,128], index: 4, kind: input, shape index: {}]   ;;  %s900_s5 = inlined_call_operand.vmem [shape: bf16[128,128], index: 5, kind: input, shape index: {}]   ;;  %s901_s6 = inlined_call_operand.vmem [shape: f32[1,128], index: 6, kind: input, shape index: {}]   ;;  %s902_s7 = inlined_call_operand.hbm [shape: f32[2,128], index: 7, kind: output, shape index: {}]  }
   0x1   :  { %v652_v0 = vld [vmem:[%s896_s1 + $0x38] sm:$0xff]  ;;  %v651_v3 = vld [vmem:[%s896_s1 + $0x30] sm:$0xff]  ;;  %v650_v6 = vld [vmem:[%s896_s1 + $0x28] sm:$0xff] }
   0x2   :  { %v660_v1 = vld [vmem:[%s896_s1 + $0x78] sm:$0xff]  ;;  %245 = vmatpush.bf16.msra.mxu0 %v652_v0  ;;  %v659_v4 = vld [vmem:[%s896_s1 + $0x70] sm:$0xff]  ;;  %v658_v7 = vld [vmem:[%s896_s1 + $0x68] sm:$0xff] }
   0x3   :  { %v668_v2 = vld [vmem:[%s896_s1 + $0xb8] sm:$0xff]  ;;  %258 = vmatpush.bf16.msra.mxu1 %v660_v1  ;;  %v667_v5 = vld [vmem:[%s896_s1 + $0xb0] sm:$0xff]  ;;  %v669_v8 = vld [vmem:[%s896_s1 + $0xc0] sm:$0xff] }
   0x4   :  { %271 = vmatpush.bf16.msra.mxu2 %v668_v2  ;;  %v666_v9 = vld [vmem:[%s896_s1 + $0xa8] sm:$0xff]  ;;  %v28_v10 = vld [vmem:[%s895_s0] sm:$0xf]  ;;  %291 = vmatpush.bf16.msra.mxu3 %v669_v8  ;;  %v677_v11 = vld [vmem:[%s898_s3 + $0x38] sm:$0xff] }
   0x5   :  { %84 = vst [vmem:[#allocation1] ss:$9 sm:$0xff] %v28_v10  ;;  %v649_v12 = vld [vmem:[%s896_s1 + $0x20] sm:$0xff]  ;;  %v676_v15 = vld [vmem:[%s898_s3 + $0x30] sm:$0xff] }
   0x6   :  { %246 = vmatpush.bf16.msra.mxu0 %v651_v3  ;;  %v657_v13 = vld [vmem:[%s896_s1 + $0x60] sm:$0xff] }
   0x7   :  { %259 = vmatpush.bf16.msra.mxu1 %v659_v4  ;;  %v665_v14 = vld [vmem:[%s896_s1 + $0xa0] sm:$0xff] }
   0x8   :  { %272 = vmatpush.bf16.msra.mxu2 %v667_v5  ;;  %367 = vmatpush.bf16.msrb.mxu3 %v677_v11 }
   0xa   :  { %247 = vmatpush.bf16.msra.mxu0 %v650_v6 }
   0xb   :  { %260 = vmatpush.bf16.msra.mxu1 %v658_v7 }
   0xc   :  { %273 = vmatpush.bf16.msra.mxu2 %v666_v9 }
   0xd   :  { %12 = vsyncpa [#allocation3], 0  ;;  %vm242_vm0 = vcmask 130048   ;;  %v648_v16 = vld [vmem:[%s896_s1 + $0x18] sm:$0xff]  ;;  %368 = vmatpush.bf16.msrb.mxu3 %v676_v15  ;;  %v675_v20 = vld [vmem:[%s898_s3 + $0x28] sm:$0xff]  ;;  %s716_s16 = smov [#allocation2]  }
   0xe   :  { %248 = vmatpush.bf16.msra.mxu0 %v649_v12  ;;  %v656_v17 = vld [vmem:[%s896_s1 + $0x58] sm:$0xff]  ;;  %v647_v21 = vld [vmem:[%s896_s1 + $0x10] sm:$0xff]  ;;  %v674_v24 = vld [vmem:[%s898_s3 + $0x20] sm:$0xff] }
   0xf   :  { %261 = vmatpush.bf16.msra.mxu1 %v657_v13  ;;  %v664_v18 = vld [vmem:[%s896_s1 + $0x98] sm:$0xff]  ;;  %v655_v22 = vld [vmem:[%s896_s1 + $0x50] sm:$0xff]  ;;  %v646_v25 = vld [vmem:[%s896_s1 + $0x8] sm:$0xff] }
  0x10   :  { %274 = vmatpush.bf16.msra.mxu2 %v665_v14  ;;  %v88_v19 = vld [vmem:[#allocation1 + $0x1b] sm:$0xff]  ;;  %v663_v23 = vld [vmem:[%s896_s1 + $0x90] sm:$0xff]  ;;  %v654_v26 = vld [vmem:[%s896_s1 + $0x48] sm:$0xff] }
  0x11   :  { %580 = vmatmul.msk.bf16.vlgmr.msra.gmra.mxu3 %vm242_vm0, %v88_v19  ;;  %v662_v27 = vld [vmem:[%s896_s1 + $0x88] sm:$0xff]  ;;  %v645_v28 = vld [vmem:[%s896_s1] sm:$0xff]  ;;  %v87_v33 = vld [vmem:[#allocation1 + $0x12] sm:$0xff] }
  0x12   :  { %249 = vmatpush.bf16.msra.mxu0 %v648_v16  ;;  %369 = vmatpush.bf16.msrb.mxu3 %v675_v20  ;;  %v653_v29 = vld [vmem:[%s896_s1 + $0x40] sm:$0xff]  ;;  %v86_v32 = vld [vmem:[#allocation1 + $0x9] sm:$0xff]  ;;  %v673_v34 = vld [vmem:[%s898_s3 + $0x18] sm:$0xff] }
  0x13   :  { %262 = vmatpush.bf16.msra.mxu1 %v656_v17  ;;  %v661_v30 = vld [vmem:[%s896_s1 + $0x80] sm:$0xff]  ;;  %v672_v35 = vld [vmem:[%s898_s3 + $0x10] sm:$0xff]  ;;  %v671_v36 = vld [vmem:[%s898_s3 + $0x8] sm:$0xff]  ;;  %s469_s1 = sshll.u32 %s716_s16, 4  ;;  %s470_s1 = int_to_ptr.vmem [resolvable:$true] %s469_s1 }
  0x14   :  { %275 = vmatpush.bf16.msra.mxu2 %v664_v18  ;;  %v85_v31 = vld [vmem:[#allocation1] sm:$0xff]  ;;  %v685_v38 = vld [vmem:[%s900_s5 + $0x38] sm:$0xff]  ;;  %v684_v39 = vld [vmem:[%s900_s5 + $0x30] sm:$0xff] }
  0x15   :  { %v670_v37 = vld [vmem:[%s898_s3] sm:$0xff]  ;;  %v683_v41 = vld [vmem:[%s900_s5 + $0x28] sm:$0xff]  ;;  %v681_v45 = vld [vmem:[%s900_s5 + $0x18] sm:$0xff] }
  0x16   :  { %250 = vmatpush.bf16.msra.mxu0 %v647_v21  ;;  %370 = vmatpush.bf16.msrb.mxu3 %v674_v24  ;;  %v682_v42 = vld [vmem:[%s900_s5 + $0x20] sm:$0xff]  ;;  %v680_v49 = vld [vmem:[%s900_s5 + $0x10] sm:$0xff]  ;;  %v679_v59 = vld [vmem:[%s900_s5 + $0x8] sm:$0xff] }
  0x17   :  { %263 = vmatpush.bf16.msra.mxu1 %v655_v22  ;;  %v687_v43 = vld [vmem:[%s897_s2] ss:$0 sm:$0xff] }
  0x18   :  { %276 = vmatpush.bf16.msra.mxu2 %v663_v23  ;;  %v678_v60 = vld [vmem:[%s900_s5] sm:$0xff]  ;;  %s471_s5 = sshll.u32 %s902_s7, 4  ;;  %s472_s5 = int_to_ptr.hbm [resolvable:$true] %s471_s5 }
  0x19   :  { %v688_v61 = vld [vmem:[%s899_s4] ss:$0 sm:$0xff] }
  0x1a   :  { %251 = vmatpush.bf16.msra.mxu0 %v646_v25  ;;  %371 = vmatpush.bf16.msrb.mxu3 %v673_v34  ;;  %v689_v3 = vld [vmem:[%s901_s6] ss:$0 sm:$0xff] }
  0x1b   :  { %264 = vmatpush.bf16.msra.mxu1 %v654_v26 }
  0x1c   :  { %277 = vmatpush.bf16.msra.mxu2 %v662_v27 }
  0x1e   :  { %252 = vmatpush.bf16.msra.mxu0 %v645_v28  ;;  %372 = vmatpush.bf16.msrb.mxu3 %v672_v35 }
  0x1f   :  { %265 = vmatpush.bf16.msra.mxu1 %v653_v29 }
  0x20   :  { %278 = vmatpush.bf16.msra.mxu2 %v661_v30 }
  0x21   :  { %253 = vmatmul.bf16.vlgmr.msra.gmra.mxu0 %v85_v31 }
  0x22   :  { %266 = vmatmul.bf16.vlgmr.msra.gmra.mxu1 %v86_v32  ;;  %373 = vmatpush.bf16.msrb.mxu3 %v671_v36 }
  0x23   :  { %279 = vmatmul.bf16.vlgmr.msra.gmra.mxu2 %v87_v33  ;;  %450 = vmatpush.bf16.msrb.mxu0 %v685_v38 }
  0x26   :  { %374 = vmatpush.bf16.msrb.mxu3 %v670_v37 }
  0x27   :  { %451 = vmatpush.bf16.msrb.mxu0 %v684_v39 }
  0x2b   :  { %452 = vmatpush.bf16.msrb.mxu0 %v683_v41 }
  0x2f   :  { %453 = vmatpush.bf16.msrb.mxu0 %v682_v42 }
  0x33   :  { %454 = vmatpush.bf16.msrb.mxu0 %v681_v45 }
  0x37   :  { %455 = vmatpush.bf16.msrb.mxu0 %v680_v49 }
  0x3b   :  { %456 = vmatpush.bf16.msrb.mxu0 %v679_v59 }
  0x3f   :  { %457 = vmatpush.bf16.msrb.mxu0 %v678_v60 }
  0x94   :  { %v293_v40 = vpop.f32.mrf.mxu3 }
  0x9c   :  { %v295_v44 = vpop.f32.mrf.mxu3 }
  0x9e   :  { %v254_v46 = vpop.f32.mrf.mxu0 }
  0x9f   :  { %v267_v47 = vpop.f32.mrf.mxu1  ;;  %v255_v48 = vadd.f32 %v687_v43, %v254_v46 }
  0xa1   :  { %v268_v50 = vadd.f32 %v267_v47, %v255_v48 }
  0xa6   :  { %v280_v51 = vpop.f32.mrf.mxu2  ;;  %v256_v53 = vpop.f32.mrf.mxu0 }
  0xa7   :  { %v281_v52 = vadd.f32 %v280_v51, %v268_v50  ;;  %v269_v54 = vpop.f32.mrf.mxu1 }
  0xa9   :  { %v294_v55 = vadd.f32 %v293_v40, %v281_v52 }
  0xab   :  { %v297_v56 = vmax.f32 %v294_v55, 0.0 }
  0xad   :  { %v298_v57 = vpack.c.bf16 %v297_v56, %v297_v56 }
  0xae   :  { %v282_v58 = vpop.f32.mrf.mxu2 }
  0xaf   :  { %375 = vmatmul.bf16.vlgmr.msrb.gmra.mxu3 %v298_v57 }
 0x132   :  { %v376_v62 = vpop.f32.mrf.mxu3 }
 0x133   :  { %v377_v63 = vadd.f32 %v688_v61, %v376_v62 }
 0x135   :  { %v380_v0 = vmax.f32 %v377_v63, 0.0 }
 0x137   :  { %v381_v1 = vpack.c.bf16 %v380_v0, %v380_v0 }
 0x139   :  { %458 = vmatmul.bf16.vlgmr.msrb.gmra.mxu0 %v381_v1 }
 0x13a   :  { %v378_v2 = vpop.f32.mrf.mxu3 }
 0x1b6   :  { %v459_v4 = vpop.f32.mrf.mxu0 }
 0x1b7   :  { %v460_v5 = vadd.f32 %v689_v3, %v459_v4 }
 0x1b9   :  { %463 = vst [vmem:[#allocation2] sm:$0x3] %v460_v5 }
 0x1ba   :  { %474 = dma.vmem_to_hbm [thread:$0]  %s470_s1, 32, %s472_s5, [#allocation3]  }
 0x1be   :  { %v461_v6 = vpop.f32.mrf.mxu0 }
 0x1bf   :  { %714 = dma.done.wait [#allocation3], 32  }
 0x1c0   :  { %715 = vsyncadd [#allocation3], 4294967264 }
 0x1c1   :  { %479 = vsyncpa [#allocation3], 1 }

</bundles_post_ra>
